<compile_context>
chip_gen: v6e
topology: v6e:2x2x1
jax: 0.10.0
libtpu: 0.0.40
codegen_flags: <defaults>
</compile_context>

<pallas_src>
import functools

import jax
import jax.numpy as jnp
from jax.experimental import pallas as pl
from jax.experimental.pallas import tpu as pltpu


def _round_up(x, m):
    return (x + m - 1) // m * m


def _vmem_limit_bytes():
    """Chip-aware scoped-VMEM limit: half the physical per-core VMEM, clamped.

    v7x: 64 MiB physical -> 32 MiB scoped;  v5e/v6e: 128 MiB -> 64 MiB scoped.
    """
    try:
        cap = int(pltpu.get_tpu_info().vmem_capacity_bytes)
    except Exception:
        cap = 64 * 1024 * 1024          # assume the smallest (v7x) if the query fails
    return int(min(max(cap // 2, 16 * 1024 * 1024), 96 * 1024 * 1024))


def _pick_band_rows(H, W, Cin, Cout, N, vmem_limit):
    """Output rows computed per grid step (one "band").

    Constraints:
      - band rows must divide H (clean grid);
      - rows*W must be a multiple of 128 (lane-dense stores / legal BlockSpec) unless the
        band is the full image (full-extent block is always legal);
      - double-buffered blocks + live values must fit the scoped VMEM limit w/ headroom;
      - keep >= 2 total parallel grid steps when possible (v7x has 2 TensorCores).
    """
    Wp = W + 2

    def vmem_bytes(rows):
        band_len = _round_up((rows + 2) * Wp + 2, 128)
        x_blk = Cin * band_len * 2              # bf16 input band (per buffer)
        y_blk = Cout * rows * W * 2             # bf16 conv-output band
        st_blk = Cout * 2 * 4                   # packed BN partials
        w_blk = 9 * Cout * Cin * 2              # resident per-tap weights
        acc = Cout * rows * Wp * 4              # f32 accumulator (live value)
        tmp = Cout * rows * W * 4               # extracted-valid temporaries
        return 2 * (x_blk + y_blk + st_blk) + w_blk + acc + tmp

    cands = [r for r in range(8, H + 1, 8) if H % r == 0 and (r * W) % 128 == 0]
    if not cands:
        cands = [H]                             # full-extent band is always legal
    budget = vmem_limit // 2                    # headroom for Mosaic temporaries
    fitting = [r for r in cands if vmem_bytes(r) <= budget] or [min(cands)]
    rows = max(fitting)
    if N * (H // rows) < 2:                     # keep both v7x TensorCores busy
        smaller = [r for r in fitting if N * (H // r) >= 2]
        if smaller:
            rows = max(smaller)
    return rows


def _col_tile(hw, cout, vmem_limit):
    """Largest multiple-of-128 divisor of hw whose double-buffered bf16-in + f32-out
    blocks fit comfortably in the scoped VMEM limit; falls back to the full extent."""
    budget = vmem_limit // 4
    cap = max(128, budget // (max(cout, 1) * (2 + 4) * 2))
    best = None
    t = 128
    while t <= min(hw, cap):
        if hw % t == 0:
            best = t
        t += 128
    return best if best is not None else hw


def _conv_stats_kernel(xb_ref, w_ref, y_ref, st_ref, *, wp, w_out, rows):
    # xb_ref: (1, 1, Cin, band_len) bf16  zero-padded input band (rows+2 padded rows,
    #                                     flattened over the padded width wp), + halo
    # w_ref:  (9, Cout, Cin)        bf16  per-tap conv weights (resident)
    # y_ref:  (1, Cout, rows*W)     bf16  conv output band (pre-BN), lane-dense
    # st_ref: (1, 1, Cout, 2)       f32   packed per-band BN partials (sum, sum of sq)
    cout = w_ref.shape[1]
    span = rows * wp

    # Nine 3x3 taps as STATIC lane-slices of the resident band; nine K=Cin MXU matmuls
    # accumulated into one f32 accumulator.  No im2col ever touches HBM.
    acc = jnp.zeros((cout, span), jnp.float32)
    for t in range(9):
        kh, kw = t // 3, t % 3
        tap = xb_ref[0, 0, :, kh * wp + kw: kh * wp + kw + span]     # (Cin, rows*wp)
        acc = acc + jnp.dot(w_ref[t], tap, preferred_element_type=jnp.float32)

    # The width-flattened frame carries 2 junk columns per row (horizontal wrap); peel
    # the valid W columns per row, store them lane-contiguously (bf16), and reduce the
    # BN partials on the fly (f32).  All VMEM-local work.
    s1 = jnp.zeros((cout, 1), jnp.float32)
    s2 = jnp.zeros((cout, 1), jnp.float32)
    for r in range(rows):
        row = acc[:, r * wp: r * wp + w_out]                         # (Cout, W) f32
        y_ref[0, :, r * w_out:(r + 1) * w_out] = row.astype(y_ref.dtype)
        s1 = s1 + jnp.sum(row, axis=1, keepdims=True)
        s2 = s2 + jnp.sum(row * row, axis=1, keepdims=True)
    st_ref[0, 0, :, 0:1] = s1
    st_ref[0, 0, :, 1:2] = s2


def _bn_relu_kernel(y_ref, a_ref, b_ref, o_ref):
    # y_ref: (1, Cout, T) bf16 ; a_ref/b_ref: (Cout, 1) f32 folded BN affine.
    # Single FMA + ReLU in f32 (v5e-safe), lane-dense load/store.
    y = y_ref[0].astype(jnp.float32)
    o_ref[0] = jnp.maximum(y * a_ref[...] + b_ref[...], 0.0).astype(o_ref.dtype)


@functools.partial(jax.jit, static_argnames=("padding",))
def basic_block(x_nchw, weight_oihw, bias, gamma, beta, *, padding=1, eps=1e-5):
    """Forward of BasicBlock: conv3x3 stride-1 pad-1 -> BatchNorm2d (batch stats) -> ReLU.

    NCHW in / NCHW out.  `bias` is accepted for API parity with nn.Conv2d but not
    applied: a per-channel shift ahead of batch-stats BatchNorm cancels exactly.
    """
    N, Cin, H, W = x_nchw.shape
    Cout, _, KH, KW = weight_oihw.shape
    assert (KH, KW) == (3, 3) and padding == 1, "kernel supports 3x3 / stride 1 / pad 1"
    del bias                                    # exactly cancelled by the BN that follows
    Hp, Wp = H + 2, W + 2
    HW = H * W

    vmem_limit = _vmem_limit_bytes()
    rows = _pick_band_rows(H, W, Cin, Cout, N, vmem_limit)
    n_bands = H // rows
    band_len = _round_up((rows + 2) * Wp + 2, 128)       # lane-rounded DMA shape
    total_len = (n_bands - 1) * rows * Wp + band_len

    # Zero-pad spatially, flatten over the padded width, and cut into overlapping row
    # bands (2-row halo each).  ~1.1-1.3x the input bytes (vs 9x for full im2col); XLA
    # fuses pad + slice + stack + cast into a single producer.
    xpad = jnp.pad(x_nchw, ((0, 0), (0, 0), (1, 1), (1, 1)))
    xflat = jnp.pad(xpad.reshape(N, Cin, Hp * Wp),
                    ((0, 0), (0, 0), (0, total_len - Hp * Wp)))
    xbands = jnp.stack(
        [xflat[:, :, b * rows * Wp: b * rows * Wp + band_len] for b in range(n_bands)],
        axis=1).astype(jnp.bfloat16)                     # (N, n_bands, Cin, band_len)

    # Per-tap weights (kh*3+kw, Cout, Cin), matching the tap order inside the kernel.
    w_taps = jnp.transpose(weight_oihw, (2, 3, 0, 1)).reshape(9, Cout, Cin)
    w_taps = w_taps.astype(jnp.bfloat16)

    cparams = pltpu.CompilerParams(
        dimension_semantics=("parallel", "parallel"),
        vmem_limit_bytes=vmem_limit,
    )

    # ---- pass 1: conv3x3 (nine K=Cin MXU matmuls, taps built in-VMEM) + BN partials ----
    kernel1 = functools.partial(_conv_stats_kernel, wp=Wp, w_out=W, rows=rows)
    y, stats = pl.pallas_call(
        kernel1,
        grid=(N, n_bands),
        in_specs=[
            pl.BlockSpec((1, 1, Cin, band_len), lambda n, b: (n, b, 0, 0)),
            pl.BlockSpec((9, Cout, Cin), lambda n, b: (0, 0, 0)),   # resident weights
        ],
        out_specs=(
            pl.BlockSpec((1, Cout, rows * W), lambda n, b: (n, 0, b)),
            pl.BlockSpec((1, 1, Cout, 2), lambda n, b: (n, b, 0, 0)),
        ),
        out_shape=(
            jax.ShapeDtypeStruct((N, Cout, HW), jnp.bfloat16),      # bf16 intermediate
            jax.ShapeDtypeStruct((N, n_bands, Cout, 2), jnp.float32),
        ),
        compiler_params=cparams,
    )(xbands, w_taps)

    # ---- BN finalize on (Cout, 2)-sized partials; fold BN into a single FMA ----
    s = jnp.sum(stats, axis=(0, 1))                      # (Cout, 2)
    cnt = jnp.float32(N * HW)
    mean = s[:, 0:1] / cnt
    var = s[:, 1:2] / cnt - mean * mean                  # biased var (training-mode BN)
    inv = jax.lax.rsqrt(var + eps)
    a = inv * gamma.reshape(Cout, 1).astype(jnp.float32)
    b = beta.reshape(Cout, 1).astype(jnp.float32) - mean * a

    # ---- pass 2: out = max(y * a + b, 0); fully parallel, lane-dense ----
    tb = _col_tile(HW, Cout, vmem_limit)
    out = pl.pallas_call(
        _bn_relu_kernel,
        grid=(N, HW // tb),
        in_specs=[
            pl.BlockSpec((1, Cout, tb), lambda n, t: (n, 0, t)),
            pl.BlockSpec((Cout, 1), lambda n, t: (0, 0)),
            pl.BlockSpec((Cout, 1), lambda n, t: (0, 0)),
        ],
        out_specs=pl.BlockSpec((1, Cout, tb), lambda n, t: (n, 0, t)),
        out_shape=jax.ShapeDtypeStruct((N, Cout, HW), x_nchw.dtype),
        compiler_params=cparams,
    )(y, a, b)

    return out.reshape(N, Cout, H, W)


if __name__ == "__main__":
    key = jax.random.PRNGKey(0)
    kx, kw, kb, kg, kbe = jax.random.split(key, 5)

    N, Cin, Cout, H, W, K = 2, 4, 8, 16, 16, 3

    x = jax.random.normal(kx, (N, Cin, H, W), dtype=jnp.float32)
    conv_w = jax.random.normal(kw, (Cout, Cin, K, K), dtype=jnp.float32) * 0.1
    conv_b = jax.random.normal(kb, (Cout,), dtype=jnp.float32) * 0.1
    bn_gamma = 1.0 + 0.1 * jax.random.normal(kg, (Cout,), dtype=jnp.float32)
    bn_beta = 0.1 * jax.random.normal(kbe, (Cout,), dtype=jnp.float32)

    out = basic_block(x, conv_w, conv_b, bn_gamma, bn_beta, padding=1)
    out = jax.block_until_ready(out)
    assert out.shape == (N, Cout, H, W)

    # Pure-JAX f32 reference (includes the conv bias, which the kernel provably drops
    # because it cancels in batch-stats BN); loose tolerance because MXU operands are bf16.
    y_ref = jax.lax.conv_general_dilated(
        x, conv_w, window_strides=(1, 1), padding=((1, 1), (1, 1)),
        dimension_numbers=("NCHW", "OIHW", "NCHW")) + conv_b.reshape(1, Cout, 1, 1)
    mean = y_ref.mean(axis=(0, 2, 3), keepdims=True)
    var = y_ref.var(axis=(0, 2, 3), keepdims=True)
    ref = jnp.maximum(
        (y_ref - mean) * jax.lax.rsqrt(var + 1e-5) * bn_gamma.reshape(1, Cout, 1, 1)
        + bn_beta.reshape(1, Cout, 1, 1), 0.0)
    assert float(jnp.max(jnp.abs(out - ref))) < 5e-2

    print("KERNEL_OK")
</pallas_src>

<mosaic_0001>
module attributes {stable_mosaic.version = 11 : i64} {
  func.func @_bn_relu_kernel(%arg0: i32, %arg1: i32, %arg2: memref<1x8x256xbf16, #tpu.memory_space<vmem>>, %arg3: memref<8x1xf32, #tpu.memory_space<vmem>>, %arg4: memref<8x1xf32, #tpu.memory_space<vmem>>, %arg5: memref<1x8x256xf32, #tpu.memory_space<vmem>>) attributes {dimension_semantics = [#tpu.dimension_semantics<parallel>, #tpu.dimension_semantics<parallel>], iteration_bounds = array<i64: 2, 1>, scalar_prefetch = 0 : i64, scratch_operands = 0 : i64, tpu.core_type = #tpu.core_type<tc>, window_params = [{transform_indices = @transform_0, window_bounds = array<i64: 1, 8, 256>}, {pipeline_mode = #tpu.pipeline_mode<synchronous>, transform_indices = @transform_1, window_bounds = array<i64: 8, 1>}, {pipeline_mode = #tpu.pipeline_mode<synchronous>, transform_indices = @transform_2, window_bounds = array<i64: 8, 1>}, {transform_indices = @transform_3, window_bounds = array<i64: 1, 8, 256>}]} {
    %c0 = arith.constant 0 : index
    %c0_0 = arith.constant 0 : index
    %c0_1 = arith.constant 0 : index
    %0 = vector.load %arg2[%c0, %c0_0, %c0_1] : memref<1x8x256xbf16, #tpu.memory_space<vmem>>, vector<1x8x256xbf16>
    %1 = vector.shape_cast %0 : vector<1x8x256xbf16> to vector<8x256xbf16>
    %2 = arith.extf %1 : vector<8x256xbf16> to vector<8x256xf32>
    %c0_2 = arith.constant 0 : index
    %c0_3 = arith.constant 0 : index
    %3 = vector.load %arg3[%c0_2, %c0_3] : memref<8x1xf32, #tpu.memory_space<vmem>>, vector<8x1xf32>
    %4 = vector.broadcast %3 : vector<8x1xf32> to vector<8x256xf32>
    %5 = arith.mulf %2, %4 : vector<8x256xf32>
    %c0_4 = arith.constant 0 : index
    %c0_5 = arith.constant 0 : index
    %6 = vector.load %arg4[%c0_4, %c0_5] : memref<8x1xf32, #tpu.memory_space<vmem>>, vector<8x1xf32>
    %7 = vector.broadcast %6 : vector<8x1xf32> to vector<8x256xf32>
    %8 = arith.addf %5, %7 : vector<8x256xf32>
    %cst = arith.constant 0.000000e+00 : f32
    %9 = vector.broadcast %cst : f32 to vector<8x256xf32>
    %10 = arith.maximumf %8, %9 : vector<8x256xf32>
    %c0_6 = arith.constant 0 : index
    %c0_7 = arith.constant 0 : index
    %c0_8 = arith.constant 0 : index
    %11 = vector.load %arg5[%c0_6, %c0_7, %c0_8] : memref<1x8x256xf32, #tpu.memory_space<vmem>>, vector<1x8x256xf32>
    %12 = vector.shape_cast %11 : vector<1x8x256xf32> to vector<8x256xf32>
    %13 = vector.shape_cast %10 : vector<8x256xf32> to vector<1x8x256xf32>
    tpu.vector_store %arg5[%c0_6, %c0_7, %c0_8], %13 {strides = array<i32>} : memref<1x8x256xf32, #tpu.memory_space<vmem>>, vector<1x8x256xf32>,
    return
  }
  func.func @transform_0(%arg0: i32, %arg1: i32) -> (i32, i32, i32) {
    %c0_i32 = arith.constant 0 : i32
    %c0_i32_0 = arith.constant 0 : i32
    return %arg0, %c0_i32, %arg1 : i32, i32, i32
  }
  func.func @transform_1(%arg0: i32, %arg1: i32) -> (i32, i32) {
    %c0_i32 = arith.constant 0 : i32
    %c0_i32_0 = arith.constant 0 : i32
    %c0_i32_1 = arith.constant 0 : i32
    return %c0_i32, %c0_i32_0 : i32, i32
  }
  func.func @transform_2(%arg0: i32, %arg1: i32) -> (i32, i32) {
    %c0_i32 = arith.constant 0 : i32
    %c0_i32_0 = arith.constant 0 : i32
    %c0_i32_1 = arith.constant 0 : i32
    return %c0_i32, %c0_i32_0 : i32, i32
  }
  func.func @transform_3(%arg0: i32, %arg1: i32) -> (i32, i32, i32) {
    %c0_i32 = arith.constant 0 : i32
    %c0_i32_0 = arith.constant 0 : i32
    return %arg0, %c0_i32, %arg1 : i32, i32, i32
  }
}

module attributes {stable_mosaic.version = 11 : i64} {
  func.func @_conv_stats_kernel(%arg0: i32, %arg1: i32, %arg2: memref<1x1x4x384xbf16, #tpu.memory_space<vmem>>, %arg3: memref<9x8x4xbf16, #tpu.memory_space<vmem>>, %arg4: memref<1x8x256xbf16, #tpu.memory_space<vmem>>, %arg5: memref<1x1x8x2xf32, #tpu.memory_space<vmem>>) attributes {dimension_semantics = [#tpu.dimension_semantics<parallel>, #tpu.dimension_semantics<parallel>], iteration_bounds = array<i64: 2, 1>, scalar_prefetch = 0 : i64, scratch_operands = 0 : i64, tpu.core_type = #tpu.core_type<tc>, window_params = [{transform_indices = @transform_0, window_bounds = array<i64: 1, 1, 4, 384>}, {pipeline_mode = #tpu.pipeline_mode<synchronous>, transform_indices = @transform_1, window_bounds = array<i64: 9, 8, 4>}, {transform_indices = @transform_2, window_bounds = array<i64: 1, 8, 256>}, {transform_indices = @transform_3, window_bounds = array<i64: 1, 1, 8, 2>}]} {
    %cst = arith.constant 0.000000e+00 : f32
    %0 = vector.broadcast %cst : f32 to vector<8x288xf32>
    %c0 = arith.constant 0 : index
    %c0_0 = arith.constant 0 : index
    %c0_1 = arith.constant 0 : index
    %c0_2 = arith.constant 0 : index
    %1 = vector.load %arg2[%c0, %c0_0, %c0_1, %c0_2] : memref<1x1x4x384xbf16, #tpu.memory_space<vmem>>, vector<1x1x4x288xbf16>
    %2 = vector.shape_cast %1 : vector<1x1x4x288xbf16> to vector<4x288xbf16>
    %c0_3 = arith.constant 0 : index
    %c0_4 = arith.constant 0 : index
    %c0_5 = arith.constant 0 : index
    %3 = vector.load %arg3[%c0_3, %c0_4, %c0_5] : memref<9x8x4xbf16, #tpu.memory_space<vmem>>, vector<1x8x4xbf16>
    %4 = vector.shape_cast %3 : vector<1x8x4xbf16> to vector<8x4xbf16>
    %cst_6 = arith.constant dense<0.000000e+00> : vector<8x288xf32>
    %5 = tpu.matmul %4, %2, %cst_6 {dimension_numbers = #tpu.dot_dimension_numbers<[1], [0], [0], [1], [0, 0, 1, 1], [], []>} : vector<8x4xbf16>, vector<4x288xbf16>, vector<8x288xf32> -> vector<8x288xf32>
    %6 = arith.addf %0, %5 : vector<8x288xf32>
    %c0_7 = arith.constant 0 : index
    %c0_8 = arith.constant 0 : index
    %c0_9 = arith.constant 0 : index
    %c1 = arith.constant 1 : index
    %7 = vector.load %arg2[%c0_7, %c0_8, %c0_9, %c1] : memref<1x1x4x384xbf16, #tpu.memory_space<vmem>>, vector<1x1x4x288xbf16>
    %8 = vector.shape_cast %7 : vector<1x1x4x288xbf16> to vector<4x288xbf16>
    %c1_10 = arith.constant 1 : index
    %c0_11 = arith.constant 0 : index
    %c0_12 = arith.constant 0 : index
    %9 = vector.load %arg3[%c1_10, %c0_11, %c0_12] : memref<9x8x4xbf16, #tpu.memory_space<vmem>>, vector<1x8x4xbf16>
    %10 = vector.shape_cast %9 : vector<1x8x4xbf16> to vector<8x4xbf16>
    %cst_13 = arith.constant dense<0.000000e+00> : vector<8x288xf32>
    %11 = tpu.matmul %10, %8, %cst_13 {dimension_numbers = #tpu.dot_dimension_numbers<[1], [0], [0], [1], [0, 0, 1, 1], [], []>} : vector<8x4xbf16>, vector<4x288xbf16>, vector<8x288xf32> -> vector<8x288xf32>
    %12 = arith.addf %6, %11 : vector<8x288xf32>
    %c0_14 = arith.constant 0 : index
    %c0_15 = arith.constant 0 : index
    %c0_16 = arith.constant 0 : index
    %c2 = arith.constant 2 : index
    %13 = vector.load %arg2[%c0_14, %c0_15, %c0_16, %c2] : memref<1x1x4x384xbf16, #tpu.memory_space<vmem>>, vector<1x1x4x288xbf16>
    %14 = vector.shape_cast %13 : vector<1x1x4x288xbf16> to vector<4x288xbf16>
    %c2_17 = arith.constant 2 : index
    %c0_18 = arith.constant 0 : index
    %c0_19 = arith.constant 0 : index
    %15 = vector.load %arg3[%c2_17, %c0_18, %c0_19] : memref<9x8x4xbf16, #tpu.memory_space<vmem>>, vector<1x8x4xbf16>
    %16 = vector.shape_cast %15 : vector<1x8x4xbf16> to vector<8x4xbf16>
    %cst_20 = arith.constant dense<0.000000e+00> : vector<8x288xf32>
    %17 = tpu.matmul %16, %14, %cst_20 {dimension_numbers = #tpu.dot_dimension_numbers<[1], [0], [0], [1], [0, 0, 1, 1], [], []>} : vector<8x4xbf16>, vector<4x288xbf16>, vector<8x288xf32> -> vector<8x288xf32>
    %18 = arith.addf %12, %17 : vector<8x288xf32>
    %c0_21 = arith.constant 0 : index
    %c0_22 = arith.constant 0 : index
    %c0_23 = arith.constant 0 : index
    %c18 = arith.constant 18 : index
    %19 = vector.load %arg2[%c0_21, %c0_22, %c0_23, %c18] : memref<1x1x4x384xbf16, #tpu.memory_space<vmem>>, vector<1x1x4x288xbf16>
    %20 = vector.shape_cast %19 : vector<1x1x4x288xbf16> to vector<4x288xbf16>
    %c3 = arith.constant 3 : index
    %c0_24 = arith.constant 0 : index
    %c0_25 = arith.constant 0 : index
    %21 = vector.load %arg3[%c3, %c0_24, %c0_25] : memref<9x8x4xbf16, #tpu.memory_space<vmem>>, vector<1x8x4xbf16>
    %22 = vector.shape_cast %21 : vector<1x8x4xbf16> to vector<8x4xbf16>
    %cst_26 = arith.constant dense<0.000000e+00> : vector<8x288xf32>
    %23 = tpu.matmul %22, %20, %cst_26 {dimension_numbers = #tpu.dot_dimension_numbers<[1], [0], [0], [1], [0, 0, 1, 1], [], []>} : vector<8x4xbf16>, vector<4x288xbf16>, vector<8x288xf32> -> vector<8x288xf32>
    %24 = arith.addf %18, %23 : vector<8x288xf32>
    %c0_27 = arith.constant 0 : index
    %c0_28 = arith.constant 0 : index
    %c0_29 = arith.constant 0 : index
    %c19 = arith.constant 19 : index
    %25 = vector.load %arg2[%c0_27, %c0_28, %c0_29, %c19] : memref<1x1x4x384xbf16, #tpu.memory_space<vmem>>, vector<1x1x4x288xbf16>
    %26 = vector.shape_cast %25 : vector<1x1x4x288xbf16> to vector<4x288xbf16>
    %c4 = arith.constant 4 : index
    %c0_30 = arith.constant 0 : index
    %c0_31 = arith.constant 0 : index
    %27 = vector.load %arg3[%c4, %c0_30, %c0_31] : memref<9x8x4xbf16, #tpu.memory_space<vmem>>, vector<1x8x4xbf16>
    %28 = vector.shape_cast %27 : vector<1x8x4xbf16> to vector<8x4xbf16>
    %cst_32 = arith.constant dense<0.000000e+00> : vector<8x288xf32>
    %29 = tpu.matmul %28, %26, %cst_32 {dimension_numbers = #tpu.dot_dimension_numbers<[1], [0], [0], [1], [0, 0, 1, 1], [], []>} : vector<8x4xbf16>, vector<4x288xbf16>, vector<8x288xf32> -> vector<8x288xf32>
    %30 = arith.addf %24, %29 : vector<8x288xf32>
    %c0_33 = arith.constant 0 : index
    %c0_34 = arith.constant 0 : index
    %c0_35 = arith.constant 0 : index
    %c20 = arith.constant 20 : index
    %31 = vector.load %arg2[%c0_33, %c0_34, %c0_35, %c20] : memref<1x1x4x384xbf16, #tpu.memory_space<vmem>>, vector<1x1x4x288xbf16>
    %32 = vector.shape_cast %31 : vector<1x1x4x288xbf16> to vector<4x288xbf16>
    %c5 = arith.constant 5 : index
    %c0_36 = arith.constant 0 : index
    %c0_37 = arith.constant 0 : index
    %33 = vector.load %arg3[%c5, %c0_36, %c0_37] : memref<9x8x4xbf16, #tpu.memory_space<vmem>>, vector<1x8x4xbf16>
    %34 = vector.shape_cast %33 : vector<1x8x4xbf16> to vector<8x4xbf16>
    %cst_38 = arith.constant dense<0.000000e+00> : vector<8x288xf32>
    %35 = tpu.matmul %34, %32, %cst_38 {dimension_numbers = #tpu.dot_dimension_numbers<[1], [0], [0], [1], [0, 0, 1, 1], [], []>} : vector<8x4xbf16>, vector<4x288xbf16>, vector<8x288xf32> -> vector<8x288xf32>
    %36 = arith.addf %30, %35 : vector<8x288xf32>
    %c0_39 = arith.constant 0 : index
    %c0_40 = arith.constant 0 : index
    %c0_41 = arith.constant 0 : index
    %c36 = arith.constant 36 : index
    %37 = vector.load %arg2[%c0_39, %c0_40, %c0_41, %c36] : memref<1x1x4x384xbf16, #tpu.memory_space<vmem>>, vector<1x1x4x288xbf16>
    %38 = vector.shape_cast %37 : vector<1x1x4x288xbf16> to vector<4x288xbf16>
    %c6 = arith.constant 6 : index
    %c0_42 = arith.constant 0 : index
    %c0_43 = arith.constant 0 : index
    %39 = vector.load %arg3[%c6, %c0_42, %c0_43] : memref<9x8x4xbf16, #tpu.memory_space<vmem>>, vector<1x8x4xbf16>
    %40 = vector.shape_cast %39 : vector<1x8x4xbf16> to vector<8x4xbf16>
    %cst_44 = arith.constant dense<0.000000e+00> : vector<8x288xf32>
    %41 = tpu.matmul %40, %38, %cst_44 {dimension_numbers = #tpu.dot_dimension_numbers<[1], [0], [0], [1], [0, 0, 1, 1], [], []>} : vector<8x4xbf16>, vector<4x288xbf16>, vector<8x288xf32> -> vector<8x288xf32>
    %42 = arith.addf %36, %41 : vector<8x288xf32>
    %c0_45 = arith.constant 0 : index
    %c0_46 = arith.constant 0 : index
    %c0_47 = arith.constant 0 : index
    %c37 = arith.constant 37 : index
    %43 = vector.load %arg2[%c0_45, %c0_46, %c0_47, %c37] : memref<1x1x4x384xbf16, #tpu.memory_space<vmem>>, vector<1x1x4x288xbf16>
    %44 = vector.shape_cast %43 : vector<1x1x4x288xbf16> to vector<4x288xbf16>
    %c7 = arith.constant 7 : index
    %c0_48 = arith.constant 0 : index
    %c0_49 = arith.constant 0 : index
    %45 = vector.load %arg3[%c7, %c0_48, %c0_49] : memref<9x8x4xbf16, #tpu.memory_space<vmem>>, vector<1x8x4xbf16>
    %46 = vector.shape_cast %45 : vector<1x8x4xbf16> to vector<8x4xbf16>
    %cst_50 = arith.constant dense<0.000000e+00> : vector<8x288xf32>
    %47 = tpu.matmul %46, %44, %cst_50 {dimension_numbers = #tpu.dot_dimension_numbers<[1], [0], [0], [1], [0, 0, 1, 1], [], []>} : vector<8x4xbf16>, vector<4x288xbf16>, vector<8x288xf32> -> vector<8x288xf32>
    %48 = arith.addf %42, %47 : vector<8x288xf32>
    %c0_51 = arith.constant 0 : index
    %c0_52 = arith.constant 0 : index
    %c0_53 = arith.constant 0 : index
    %c38 = arith.constant 38 : index
    %49 = vector.load %arg2[%c0_51, %c0_52, %c0_53, %c38] : memref<1x1x4x384xbf16, #tpu.memory_space<vmem>>, vector<1x1x4x288xbf16>
    %50 = vector.shape_cast %49 : vector<1x1x4x288xbf16> to vector<4x288xbf16>
    %c8 = arith.constant 8 : index
    %c0_54 = arith.constant 0 : index
    %c0_55 = arith.constant 0 : index
    %51 = vector.load %arg3[%c8, %c0_54, %c0_55] : memref<9x8x4xbf16, #tpu.memory_space<vmem>>, vector<1x8x4xbf16>
    %52 = vector.shape_cast %51 : vector<1x8x4xbf16> to vector<8x4xbf16>
    %cst_56 = arith.constant dense<0.000000e+00> : vector<8x288xf32>
    %53 = tpu.matmul %52, %50, %cst_56 {dimension_numbers = #tpu.dot_dimension_numbers<[1], [0], [0], [1], [0, 0, 1, 1], [], []>} : vector<8x4xbf16>, vector<4x288xbf16>, vector<8x288xf32> -> vector<8x288xf32>
    %54 = arith.addf %48, %53 : vector<8x288xf32>
    %cst_57 = arith.constant 0.000000e+00 : f32
    %55 = vector.broadcast %cst_57 : f32 to vector<8x1xf32>
    %cst_58 = arith.constant 0.000000e+00 : f32
    %56 = vector.broadcast %cst_58 : f32 to vector<8x1xf32>
    %57 = vector.extract_strided_slice %54 {offsets = [0, 0], sizes = [8, 16], strides = [1, 1]} : vector<8x288xf32> to vector<8x16xf32>
    %58 = arith.truncf %57 : vector<8x16xf32> to vector<8x16xbf16>
    %c0_59 = arith.constant 0 : index
    %c0_60 = arith.constant 0 : index
    %c0_61 = arith.constant 0 : index
    %59 = vector.load %arg4[%c0_59, %c0_60, %c0_61] : memref<1x8x256xbf16, #tpu.memory_space<vmem>>, vector<1x8x16xbf16>
    %60 = vector.shape_cast %59 : vector<1x8x16xbf16> to vector<8x16xbf16>
    %61 = vector.shape_cast %58 : vector<8x16xbf16> to vector<1x8x16xbf16>
    tpu.vector_store %arg4[%c0_59, %c0_60, %c0_61], %61 {strides = array<i32>} : memref<1x8x256xbf16, #tpu.memory_space<vmem>>, vector<1x8x16xbf16>,
    %cst_62 = arith.constant dense<0.000000e+00> : vector<8xf32>
    %62 = vector.multi_reduction <add>, %57, %cst_62 [1] : vector<8x16xf32> to vector<8xf32>
    %63 = vector.shape_cast %62 : vector<8xf32> to vector<8x1xf32>
    %64 = arith.addf %55, %63 : vector<8x1xf32>
    %65 = arith.mulf %57, %57 : vector<8x16xf32>
    %cst_63 = arith.constant dense<0.000000e+00> : vector<8xf32>
    %66 = vector.multi_reduction <add>, %65, %cst_63 [1] : vector<8x16xf32> to vector<8xf32>
    %67 = vector.shape_cast %66 : vector<8xf32> to vector<8x1xf32>
    %68 = arith.addf %56, %67 : vector<8x1xf32>
    %69 = vector.extract_strided_slice %54 {offsets = [0, 18], sizes = [8, 16], strides = [1, 1]} : vector<8x288xf32> to vector<8x16xf32>
    %70 = arith.truncf %69 : vector<8x16xf32> to vector<8x16xbf16>
    %c0_64 = arith.constant 0 : index
    %c0_65 = arith.constant 0 : index
    %c16 = arith.constant 16 : index
    %71 = vector.load %arg4[%c0_64, %c0_65, %c16] : memref<1x8x256xbf16, #tpu.memory_space<vmem>>, vector<1x8x16xbf16>
    %72 = vector.shape_cast %71 : vector<1x8x16xbf16> to vector<8x16xbf16>
    %73 = vector.shape_cast %70 : vector<8x16xbf16> to vector<1x8x16xbf16>
    tpu.vector_store %arg4[%c0_64, %c0_65, %c16], %73 {strides = array<i32>} : memref<1x8x256xbf16, #tpu.memory_space<vmem>>, vector<1x8x16xbf16>,
    %cst_66 = arith.constant dense<0.000000e+00> : vector<8xf32>
    %74 = vector.multi_reduction <add>, %69, %cst_66 [1] : vector<8x16xf32> to vector<8xf32>
    %75 = vector.shape_cast %74 : vector<8xf32> to vector<8x1xf32>
    %76 = arith.addf %64, %75 : vector<8x1xf32>
    %77 = arith.mulf %69, %69 : vector<8x16xf32>
    %cst_67 = arith.constant dense<0.000000e+00> : vector<8xf32>
    %78 = vector.multi_reduction <add>, %77, %cst_67 [1] : vector<8x16xf32> to vector<8xf32>
    %79 = vector.shape_cast %78 : vector<8xf32> to vector<8x1xf32>
    %80 = arith.addf %68, %79 : vector<8x1xf32>
    %81 = vector.extract_strided_slice %54 {offsets = [0, 36], sizes = [8, 16], strides = [1, 1]} : vector<8x288xf32> to vector<8x16xf32>
    %82 = arith.truncf %81 : vector<8x16xf32> to vector<8x16xbf16>
    %c0_68 = arith.constant 0 : index
    %c0_69 = arith.constant 0 : index
    %c32 = arith.constant 32 : index
    %83 = vector.load %arg4[%c0_68, %c0_69, %c32] : memref<1x8x256xbf16, #tpu.memory_space<vmem>>, vector<1x8x16xbf16>
    %84 = vector.shape_cast %83 : vector<1x8x16xbf16> to vector<8x16xbf16>
    %85 = vector.shape_cast %82 : vector<8x16xbf16> to vector<1x8x16xbf16>
    tpu.vector_store %arg4[%c0_68, %c0_69, %c32], %85 {strides = array<i32>} : memref<1x8x256xbf16, #tpu.memory_space<vmem>>, vector<1x8x16xbf16>,
    %cst_70 = arith.constant dense<0.000000e+00> : vector<8xf32>
    %86 = vector.multi_reduction <add>, %81, %cst_70 [1] : vector<8x16xf32> to vector<8xf32>
    %87 = vector.shape_cast %86 : vector<8xf32> to vector<8x1xf32>
    %88 = arith.addf %76, %87 : vector<8x1xf32>
    %89 = arith.mulf %81, %81 : vector<8x16xf32>
    %cst_71 = arith.constant dense<0.000000e+00> : vector<8xf32>
    %90 = vector.multi_reduction <add>, %89, %cst_71 [1] : vector<8x16xf32> to vector<8xf32>
    %91 = vector.shape_cast %90 : vector<8xf32> to vector<8x1xf32>
    %92 = arith.addf %80, %91 : vector<8x1xf32>
    %93 = vector.extract_strided_slice %54 {offsets = [0, 54], sizes = [8, 16], strides = [1, 1]} : vector<8x288xf32> to vector<8x16xf32>
    %94 = arith.truncf %93 : vector<8x16xf32> to vector<8x16xbf16>
    %c0_72 = arith.constant 0 : index
    %c0_73 = arith.constant 0 : index
    %c48 = arith.constant 48 : index
    %95 = vector.load %arg4[%c0_72, %c0_73, %c48] : memref<1x8x256xbf16, #tpu.memory_space<vmem>>, vector<1x8x16xbf16>
    %96 = vector.shape_cast %95 : vector<1x8x16xbf16> to vector<8x16xbf16>
    %97 = vector.shape_cast %94 : vector<8x16xbf16> to vector<1x8x16xbf16>
    tpu.vector_store %arg4[%c0_72, %c0_73, %c48], %97 {strides = array<i32>} : memref<1x8x256xbf16, #tpu.memory_space<vmem>>, vector<1x8x16xbf16>,
    %cst_74 = arith.constant dense<0.000000e+00> : vector<8xf32>
    %98 = vector.multi_reduction <add>, %93, %cst_74 [1] : vector<8x16xf32> to vector<8xf32>
    %99 = vector.shape_cast %98 : vector<8xf32> to vector<8x1xf32>
    %100 = arith.addf %88, %99 : vector<8x1xf32>
    %101 = arith.mulf %93, %93 : vector<8x16xf32>
    %cst_75 = arith.constant dense<0.000000e+00> : vector<8xf32>
    %102 = vector.multi_reduction <add>, %101, %cst_75 [1] : vector<8x16xf32> to vector<8xf32>
    %103 = vector.shape_cast %102 : vector<8xf32> to vector<8x1xf32>
    %104 = arith.addf %92, %103 : vector<8x1xf32>
    %105 = vector.extract_strided_slice %54 {offsets = [0, 72], sizes = [8, 16], strides = [1, 1]} : vector<8x288xf32> to vector<8x16xf32>
    %106 = arith.truncf %105 : vector<8x16xf32> to vector<8x16xbf16>
    %c0_76 = arith.constant 0 : index
    %c0_77 = arith.constant 0 : index
    %c64 = arith.constant 64 : index
    %107 = vector.load %arg4[%c0_76, %c0_77, %c64] : memref<1x8x256xbf16, #tpu.memory_space<vmem>>, vector<1x8x16xbf16>
    %108 = vector.shape_cast %107 : vector<1x8x16xbf16> to vector<8x16xbf16>
    %109 = vector.shape_cast %106 : vector<8x16xbf16> to vector<1x8x16xbf16>
    tpu.vector_store %arg4[%c0_76, %c0_77, %c64], %109 {strides = array<i32>} : memref<1x8x256xbf16, #tpu.memory_space<vmem>>, vector<1x8x16xbf16>,
    %cst_78 = arith.constant dense<0.000000e+00> : vector<8xf32>
    %110 = vector.multi_reduction <add>, %105, %cst_78 [1] : vector<8x16xf32> to vector<8xf32>
    %111 = vector.shape_cast %110 : vector<8xf32> to vector<8x1xf32>
    %112 = arith.addf %100, %111 : vector<8x1xf32>
    %113 = arith.mulf %105, %105 : vector<8x16xf32>
    %cst_79 = arith.constant dense<0.000000e+00> : vector<8xf32>
    %114 = vector.multi_reduction <add>, %113, %cst_79 [1] : vector<8x16xf32> to vector<8xf32>
    %115 = vector.shape_cast %114 : vector<8xf32> to vector<8x1xf32>
    %116 = arith.addf %104, %115 : vector<8x1xf32>
    %117 = vector.extract_strided_slice %54 {offsets = [0, 90], sizes = [8, 16], strides = [1, 1]} : vector<8x288xf32> to vector<8x16xf32>
    %118 = arith.truncf %117 : vector<8x16xf32> to vector<8x16xbf16>
    %c0_80 = arith.constant 0 : index
    %c0_81 = arith.constant 0 : index
    %c80 = arith.constant 80 : index
    %119 = vector.load %arg4[%c0_80, %c0_81, %c80] : memref<1x8x256xbf16, #tpu.memory_space<vmem>>, vector<1x8x16xbf16>
    %120 = vector.shape_cast %119 : vector<1x8x16xbf16> to vector<8x16xbf16>
    %121 = vector.shape_cast %118 : vector<8x16xbf16> to vector<1x8x16xbf16>
    tpu.vector_store %arg4[%c0_80, %c0_81, %c80], %121 {strides = array<i32>} : memref<1x8x256xbf16, #tpu.memory_space<vmem>>, vector<1x8x16xbf16>,
    %cst_82 = arith.constant dense<0.000000e+00> : vector<8xf32>
    %122 = vector.multi_reduction <add>, %117, %cst_82 [1] : vector<8x16xf32> to vector<8xf32>
    %123 = vector.shape_cast %122 : vector<8xf32> to vector<8x1xf32>
    %124 = arith.addf %112, %123 : vector<8x1xf32>
    %125 = arith.mulf %117, %117 : vector<8x16xf32>
    %cst_83 = arith.constant dense<0.000000e+00> : vector<8xf32>
    %126 = vector.multi_reduction <add>, %125, %cst_83 [1] : vector<8x16xf32> to vector<8xf32>
    %127 = vector.shape_cast %126 : vector<8xf32> to vector<8x1xf32>
    %128 = arith.addf %116, %127 : vector<8x1xf32>
    %129 = vector.extract_strided_slice %54 {offsets = [0, 108], sizes = [8, 16], strides = [1, 1]} : vector<8x288xf32> to vector<8x16xf32>
    %130 = arith.truncf %129 : vector<8x16xf32> to vector<8x16xbf16>
    %c0_84 = arith.constant 0 : index
    %c0_85 = arith.constant 0 : index
    %c96 = arith.constant 96 : index
    %131 = vector.load %arg4[%c0_84, %c0_85, %c96] : memref<1x8x256xbf16, #tpu.memory_space<vmem>>, vector<1x8x16xbf16>
    %132 = vector.shape_cast %131 : vector<1x8x16xbf16> to vector<8x16xbf16>
    %133 = vector.shape_cast %130 : vector<8x16xbf16> to vector<1x8x16xbf16>
    tpu.vector_store %arg4[%c0_84, %c0_85, %c96], %133 {strides = array<i32>} : memref<1x8x256xbf16, #tpu.memory_space<vmem>>, vector<1x8x16xbf16>,
    %cst_86 = arith.constant dense<0.000000e+00> : vector<8xf32>
    %134 = vector.multi_reduction <add>, %129, %cst_86 [1] : vector<8x16xf32> to vector<8xf32>
    %135 = vector.shape_cast %134 : vector<8xf32> to vector<8x1xf32>
    %136 = arith.addf %124, %135 : vector<8x1xf32>
    %137 = arith.mulf %129, %129 : vector<8x16xf32>
    %cst_87 = arith.constant dense<0.000000e+00> : vector<8xf32>
    %138 = vector.multi_reduction <add>, %137, %cst_87 [1] : vector<8x16xf32> to vector<8xf32>
    %139 = vector.shape_cast %138 : vector<8xf32> to vector<8x1xf32>
    %140 = arith.addf %128, %139 : vector<8x1xf32>
    %141 = vector.extract_strided_slice %54 {offsets = [0, 126], sizes = [8, 16], strides = [1, 1]} : vector<8x288xf32> to vector<8x16xf32>
    %142 = arith.truncf %141 : vector<8x16xf32> to vector<8x16xbf16>
    %c0_88 = arith.constant 0 : index
    %c0_89 = arith.constant 0 : index
    %c112 = arith.constant 112 : index
    %143 = vector.load %arg4[%c0_88, %c0_89, %c112] : memref<1x8x256xbf16, #tpu.memory_space<vmem>>, vector<1x8x16xbf16>
    %144 = vector.shape_cast %143 : vector<1x8x16xbf16> to vector<8x16xbf16>
    %145 = vector.shape_cast %142 : vector<8x16xbf16> to vector<1x8x16xbf16>
    tpu.vector_store %arg4[%c0_88, %c0_89, %c112], %145 {strides = array<i32>} : memref<1x8x256xbf16, #tpu.memory_space<vmem>>, vector<1x8x16xbf16>,
    %cst_90 = arith.constant dense<0.000000e+00> : vector<8xf32>
    %146 = vector.multi_reduction <add>, %141, %cst_90 [1] : vector<8x16xf32> to vector<8xf32>
    %147 = vector.shape_cast %146 : vector<8xf32> to vector<8x1xf32>
    %148 = arith.addf %136, %147 : vector<8x1xf32>
    %149 = arith.mulf %141, %141 : vector<8x16xf32>
    %cst_91 = arith.constant dense<0.000000e+00> : vector<8xf32>
    %150 = vector.multi_reduction <add>, %149, %cst_91 [1] : vector<8x16xf32> to vector<8xf32>
    %151 = vector.shape_cast %150 : vector<8xf32> to vector<8x1xf32>
    %152 = arith.addf %140, %151 : vector<8x1xf32>
    %153 = vector.extract_strided_slice %54 {offsets = [0, 144], sizes = [8, 16], strides = [1, 1]} : vector<8x288xf32> to vector<8x16xf32>
    %154 = arith.truncf %153 : vector<8x16xf32> to vector<8x16xbf16>
    %c0_92 = arith.constant 0 : index
    %c0_93 = arith.constant 0 : index
    %c128 = arith.constant 128 : index
    %155 = vector.load %arg4[%c0_92, %c0_93, %c128] : memref<1x8x256xbf16, #tpu.memory_space<vmem>>, vector<1x8x16xbf16>
    %156 = vector.shape_cast %155 : vector<1x8x16xbf16> to vector<8x16xbf16>
    %157 = vector.shape_cast %154 : vector<8x16xbf16> to vector<1x8x16xbf16>
    tpu.vector_store %arg4[%c0_92, %c0_93, %c128], %157 {strides = array<i32>} : memref<1x8x256xbf16, #tpu.memory_space<vmem>>, vector<1x8x16xbf16>,
    %cst_94 = arith.constant dense<0.000000e+00> : vector<8xf32>
    %158 = vector.multi_reduction <add>, %153, %cst_94 [1] : vector<8x16xf32> to vector<8xf32>
    %159 = vector.shape_cast %158 : vector<8xf32> to vector<8x1xf32>
    %160 = arith.addf %148, %159 : vector<8x1xf32>
    %161 = arith.mulf %153, %153 : vector<8x16xf32>
    %cst_95 = arith.constant dense<0.000000e+00> : vector<8xf32>
    %162 = vector.multi_reduction <add>, %161, %cst_95 [1] : vector<8x16xf32> to vector<8xf32>
    %163 = vector.shape_cast %162 : vector<8xf32> to vector<8x1xf32>
    %164 = arith.addf %152, %163 : vector<8x1xf32>
    %165 = vector.extract_strided_slice %54 {offsets = [0, 162], sizes = [8, 16], strides = [1, 1]} : vector<8x288xf32> to vector<8x16xf32>
    %166 = arith.truncf %165 : vector<8x16xf32> to vector<8x16xbf16>
    %c0_96 = arith.constant 0 : index
    %c0_97 = arith.constant 0 : index
    %c144 = arith.constant 144 : index
    %167 = vector.load %arg4[%c0_96, %c0_97, %c144] : memref<1x8x256xbf16, #tpu.memory_space<vmem>>, vector<1x8x16xbf16>
    %168 = vector.shape_cast %167 : vector<1x8x16xbf16> to vector<8x16xbf16>
    %169 = vector.shape_cast %166 : vector<8x16xbf16> to vector<1x8x16xbf16>
    tpu.vector_store %arg4[%c0_96, %c0_97, %c144], %169 {strides = array<i32>} : memref<1x8x256xbf16, #tpu.memory_space<vmem>>, vector<1x8x16xbf16>,
    %cst_98 = arith.constant dense<0.000000e+00> : vector<8xf32>
    %170 = vector.multi_reduction <add>, %165, %cst_98 [1] : vector<8x16xf32> to vector<8xf32>
    %171 = vector.shape_cast %170 : vector<8xf32> to vector<8x1xf32>
    %172 = arith.addf %160, %171 : vector<8x1xf32>
    %173 = arith.mulf %165, %165 : vector<8x16xf32>
    %cst_99 = arith.constant dense<0.000000e+00> : vector<8xf32>
    %174 = vector.multi_reduction <add>, %173, %cst_99 [1] : vector<8x16xf32> to vector<8xf32>
    %175 = vector.shape_cast %174 : vector<8xf32> to vector<8x1xf32>
    %176 = arith.addf %164, %175 : vector<8x1xf32>
    %177 = vector.extract_strided_slice %54 {offsets = [0, 180], sizes = [8, 16], strides = [1, 1]} : vector<8x288xf32> to vector<8x16xf32>
    %178 = arith.truncf %177 : vector<8x16xf32> to vector<8x16xbf16>
    %c0_100 = arith.constant 0 : index
    %c0_101 = arith.constant 0 : index
    %c160 = arith.constant 160 : index
    %179 = vector.load %arg4[%c0_100, %c0_101, %c160] : memref<1x8x256xbf16, #tpu.memory_space<vmem>>, vector<1x8x16xbf16>
    %180 = vector.shape_cast %179 : vector<1x8x16xbf16> to vector<8x16xbf16>
    %181 = vector.shape_cast %178 : vector<8x16xbf16> to vector<1x8x16xbf16>
    tpu.vector_store %arg4[%c0_100, %c0_101, %c160], %181 {strides = array<i32>} : memref<1x8x256xbf16, #tpu.memory_space<vmem>>, vector<1x8x16xbf16>,
    %cst_102 = arith.constant dense<0.000000e+00> : vector<8xf32>
    %182 = vector.multi_reduction <add>, %177, %cst_102 [1] : vector<8x16xf32> to vector<8xf32>
    %183 = vector.shape_cast %182 : vector<8xf32> to vector<8x1xf32>
    %184 = arith.addf %172, %183 : vector<8x1xf32>
    %185 = arith.mulf %177, %177 : vector<8x16xf32>
    %cst_103 = arith.constant dense<0.000000e+00> : vector<8xf32>
    %186 = vector.multi_reduction <add>, %185, %cst_103 [1] : vector<8x16xf32> to vector<8xf32>
    %187 = vector.shape_cast %186 : vector<8xf32> to vector<8x1xf32>
    %188 = arith.addf %176, %187 : vector<8x1xf32>
    %189 = vector.extract_strided_slice %54 {offsets = [0, 198], sizes = [8, 16], strides = [1, 1]} : vector<8x288xf32> to vector<8x16xf32>
    %190 = arith.truncf %189 : vector<8x16xf32> to vector<8x16xbf16>
    %c0_104 = arith.constant 0 : index
    %c0_105 = arith.constant 0 : index
    %c176 = arith.constant 176 : index
    %191 = vector.load %arg4[%c0_104, %c0_105, %c176] : memref<1x8x256xbf16, #tpu.memory_space<vmem>>, vector<1x8x16xbf16>
    %192 = vector.shape_cast %191 : vector<1x8x16xbf16> to vector<8x16xbf16>
    %193 = vector.shape_cast %190 : vector<8x16xbf16> to vector<1x8x16xbf16>
    tpu.vector_store %arg4[%c0_104, %c0_105, %c176], %193 {strides = array<i32>} : memref<1x8x256xbf16, #tpu.memory_space<vmem>>, vector<1x8x16xbf16>,
    %cst_106 = arith.constant dense<0.000000e+00> : vector<8xf32>
    %194 = vector.multi_reduction <add>, %189, %cst_106 [1] : vector<8x16xf32> to vector<8xf32>
    %195 = vector.shape_cast %194 : vector<8xf32> to vector<8x1xf32>
    %196 = arith.addf %184, %195 : vector<8x1xf32>
    %197 = arith.mulf %189, %189 : vector<8x16xf32>
    %cst_107 = arith.constant dense<0.000000e+00> : vector<8xf32>
    %198 = vector.multi_reduction <add>, %197, %cst_107 [1] : vector<8x16xf32> to vector<8xf32>
    %199 = vector.shape_cast %198 : vector<8xf32> to vector<8x1xf32>
    %200 = arith.addf %188, %199 : vector<8x1xf32>
    %201 = vector.extract_strided_slice %54 {offsets = [0, 216], sizes = [8, 16], strides = [1, 1]} : vector<8x288xf32> to vector<8x16xf32>
    %202 = arith.truncf %201 : vector<8x16xf32> to vector<8x16xbf16>
    %c0_108 = arith.constant 0 : index
    %c0_109 = arith.constant 0 : index
    %c192 = arith.constant 192 : index
    %203 = vector.load %arg4[%c0_108, %c0_109, %c192] : memref<1x8x256xbf16, #tpu.memory_space<vmem>>, vector<1x8x16xbf16>
    %204 = vector.shape_cast %203 : vector<1x8x16xbf16> to vector<8x16xbf16>
    %205 = vector.shape_cast %202 : vector<8x16xbf16> to vector<1x8x16xbf16>
    tpu.vector_store %arg4[%c0_108, %c0_109, %c192], %205 {strides = array<i32>} : memref<1x8x256xbf16, #tpu.memory_space<vmem>>, vector<1x8x16xbf16>,
    %cst_110 = arith.constant dense<0.000000e+00> : vector<8xf32>
    %206 = vector.multi_reduction <add>, %201, %cst_110 [1] : vector<8x16xf32> to vector<8xf32>
    %207 = vector.shape_cast %206 : vector<8xf32> to vector<8x1xf32>
    %208 = arith.addf %196, %207 : vector<8x1xf32>
    %209 = arith.mulf %201, %201 : vector<8x16xf32>
    %cst_111 = arith.constant dense<0.000000e+00> : vector<8xf32>
    %210 = vector.multi_reduction <add>, %209, %cst_111 [1] : vector<8x16xf32> to vector<8xf32>
    %211 = vector.shape_cast %210 : vector<8xf32> to vector<8x1xf32>
    %212 = arith.addf %200, %211 : vector<8x1xf32>
    %213 = vector.extract_strided_slice %54 {offsets = [0, 234], sizes = [8, 16], strides = [1, 1]} : vector<8x288xf32> to vector<8x16xf32>
    %214 = arith.truncf %213 : vector<8x16xf32> to vector<8x16xbf16>
    %c0_112 = arith.constant 0 : index
    %c0_113 = arith.constant 0 : index
    %c208 = arith.constant 208 : index
    %215 = vector.load %arg4[%c0_112, %c0_113, %c208] : memref<1x8x256xbf16, #tpu.memory_space<vmem>>, vector<1x8x16xbf16>
    %216 = vector.shape_cast %215 : vector<1x8x16xbf16> to vector<8x16xbf16>
    %217 = vector.shape_cast %214 : vector<8x16xbf16> to vector<1x8x16xbf16>
    tpu.vector_store %arg4[%c0_112, %c0_113, %c208], %217 {strides = array<i32>} : memref<1x8x256xbf16, #tpu.memory_space<vmem>>, vector<1x8x16xbf16>,
    %cst_114 = arith.constant dense<0.000000e+00> : vector<8xf32>
    %218 = vector.multi_reduction <add>, %213, %cst_114 [1] : vector<8x16xf32> to vector<8xf32>
    %219 = vector.shape_cast %218 : vector<8xf32> to vector<8x1xf32>
    %220 = arith.addf %208, %219 : vector<8x1xf32>
    %221 = arith.mulf %213, %213 : vector<8x16xf32>
    %cst_115 = arith.constant dense<0.000000e+00> : vector<8xf32>
    %222 = vector.multi_reduction <add>, %221, %cst_115 [1] : vector<8x16xf32> to vector<8xf32>
    %223 = vector.shape_cast %222 : vector<8xf32> to vector<8x1xf32>
    %224 = arith.addf %212, %223 : vector<8x1xf32>
    %225 = vector.extract_strided_slice %54 {offsets = [0, 252], sizes = [8, 16], strides = [1, 1]} : vector<8x288xf32> to vector<8x16xf32>
    %226 = arith.truncf %225 : vector<8x16xf32> to vector<8x16xbf16>
    %c0_116 = arith.constant 0 : index
    %c0_117 = arith.constant 0 : index
    %c224 = arith.constant 224 : index
    %227 = vector.load %arg4[%c0_116, %c0_117, %c224] : memref<1x8x256xbf16, #tpu.memory_space<vmem>>, vector<1x8x16xbf16>
    %228 = vector.shape_cast %227 : vector<1x8x16xbf16> to vector<8x16xbf16>
    %229 = vector.shape_cast %226 : vector<8x16xbf16> to vector<1x8x16xbf16>
    tpu.vector_store %arg4[%c0_116, %c0_117, %c224], %229 {strides = array<i32>} : memref<1x8x256xbf16, #tpu.memory_space<vmem>>, vector<1x8x16xbf16>,
    %cst_118 = arith.constant dense<0.000000e+00> : vector<8xf32>
    %230 = vector.multi_reduction <add>, %225, %cst_118 [1] : vector<8x16xf32> to vector<8xf32>
    %231 = vector.shape_cast %230 : vector<8xf32> to vector<8x1xf32>
    %232 = arith.addf %220, %231 : vector<8x1xf32>
    %233 = arith.mulf %225, %225 : vector<8x16xf32>
    %cst_119 = arith.constant dense<0.000000e+00> : vector<8xf32>
    %234 = vector.multi_reduction <add>, %233, %cst_119 [1] : vector<8x16xf32> to vector<8xf32>
    %235 = vector.shape_cast %234 : vector<8xf32> to vector<8x1xf32>
    %236 = arith.addf %224, %235 : vector<8x1xf32>
    %237 = vector.extract_strided_slice %54 {offsets = [0, 270], sizes = [8, 16], strides = [1, 1]} : vector<8x288xf32> to vector<8x16xf32>
    %238 = arith.truncf %237 : vector<8x16xf32> to vector<8x16xbf16>
    %c0_120 = arith.constant 0 : index
    %c0_121 = arith.constant 0 : index
    %c240 = arith.constant 240 : index
    %239 = vector.load %arg4[%c0_120, %c0_121, %c240] : memref<1x8x256xbf16, #tpu.memory_space<vmem>>, vector<1x8x16xbf16>
    %240 = vector.shape_cast %239 : vector<1x8x16xbf16> to vector<8x16xbf16>
    %241 = vector.shape_cast %238 : vector<8x16xbf16> to vector<1x8x16xbf16>
    tpu.vector_store %arg4[%c0_120, %c0_121, %c240], %241 {strides = array<i32>} : memref<1x8x256xbf16, #tpu.memory_space<vmem>>, vector<1x8x16xbf16>,
    %cst_122 = arith.constant dense<0.000000e+00> : vector<8xf32>
    %242 = vector.multi_reduction <add>, %237, %cst_122 [1] : vector<8x16xf32> to vector<8xf32>
    %243 = vector.shape_cast %242 : vector<8xf32> to vector<8x1xf32>
    %244 = arith.addf %232, %243 : vector<8x1xf32>
    %245 = arith.mulf %237, %237 : vector<8x16xf32>
    %cst_123 = arith.constant dense<0.000000e+00> : vector<8xf32>
    %246 = vector.multi_reduction <add>, %245, %cst_123 [1] : vector<8x16xf32> to vector<8xf32>
    %247 = vector.shape_cast %246 : vector<8xf32> to vector<8x1xf32>
    %248 = arith.addf %236, %247 : vector<8x1xf32>
    %c0_124 = arith.constant 0 : index
    %c0_125 = arith.constant 0 : index
    %c0_126 = arith.constant 0 : index
    %c0_127 = arith.constant 0 : index
    %249 = vector.load %arg5[%c0_124, %c0_125, %c0_126, %c0_127] : memref<1x1x8x2xf32, #tpu.memory_space<vmem>>, vector<1x1x8x1xf32>
    %250 = vector.shape_cast %249 : vector<1x1x8x1xf32> to vector<8x1xf32>
    %251 = vector.shape_cast %244 : vector<8x1xf32> to vector<1x1x8x1xf32>
    tpu.vector_store %arg5[%c0_124, %c0_125, %c0_126, %c0_127], %251 {strides = array<i32>} : memref<1x1x8x2xf32, #tpu.memory_space<vmem>>, vector<1x1x8x1xf32>,
    %c0_128 = arith.constant 0 : index
    %c0_129 = arith.constant 0 : index
    %c0_130 = arith.constant 0 : index
    %c1_131 = arith.constant 1 : index
    %252 = vector.load %arg5[%c0_128, %c0_129, %c0_130, %c1_131] : memref<1x1x8x2xf32, #tpu.memory_space<vmem>>, vector<1x1x8x1xf32>
    %253 = vector.shape_cast %252 : vector<1x1x8x1xf32> to vector<8x1xf32>
    %254 = vector.shape_cast %248 : vector<8x1xf32> to vector<1x1x8x1xf32>
    tpu.vector_store %arg5[%c0_128, %c0_129, %c0_130, %c1_131], %254 {strides = array<i32>} : memref<1x1x8x2xf32, #tpu.memory_space<vmem>>, vector<1x1x8x1xf32>,
    return
  }
  func.func @transform_0(%arg0: i32, %arg1: i32) -> (i32, i32, i32, i32) {
    %c0_i32 = arith.constant 0 : i32
    %c0_i32_0 = arith.constant 0 : i32
    %c0_i32_1 = arith.constant 0 : i32
    return %arg0, %arg1, %c0_i32, %c0_i32_0 : i32, i32, i32, i32
  }
  func.func @transform_1(%arg0: i32, %arg1: i32) -> (i32, i32, i32) {
    %c0_i32 = arith.constant 0 : i32
    %c0_i32_0 = arith.constant 0 : i32
    %c0_i32_1 = arith.constant 0 : i32
    %c0_i32_2 = arith.constant 0 : i32
    return %c0_i32, %c0_i32_0, %c0_i32_1 : i32, i32, i32
  }
  func.func @transform_2(%arg0: i32, %arg1: i32) -> (i32, i32, i32) {
    %c0_i32 = arith.constant 0 : i32
    %c0_i32_0 = arith.constant 0 : i32
    return %arg0, %c0_i32, %arg1 : i32, i32, i32
  }
  func.func @transform_3(%arg0: i32, %arg1: i32) -> (i32, i32, i32, i32) {
    %c0_i32 = arith.constant 0 : i32
    %c0_i32_0 = arith.constant 0 : i32
    %c0_i32_1 = arith.constant 0 : i32
    return %arg0, %arg1, %c0_i32, %c0_i32_0 : i32, i32, i32, i32
  }
}

</mosaic_0001>

<bundles_post_ra>
// kernel: basic_block.3
= control target key start
LH: loop header
LB: loop body
LE: loop exit
PB: predicated region body
PF: predicated region fallthrough
CT: control target
= control target key end

     0   :  { %s404_s12 = smov 0   ;;  %s406_s13 = smov 0   ;;  %s443_s0 = inlined_call_operand.vmem [shape: bf16[2,8,256], index: 0, kind: input, shape index: {}]   ;;  %s444_s1 = inlined_call_operand.vmem [shape: f32[8,1], index: 1, kind: input, shape index: {}]   ;;  %s445_s2 = inlined_call_operand.vmem [shape: f32[8,1], index: 2, kind: input, shape index: {}]   ;;  %s446_s3 = inlined_call_operand.vmem [shape: f32[2,8,256], index: 3, kind: output, shape index: {}]  }
   0x1   :  { %s408_s14 = smov 0  }
   0x2 LB: > { %s25_s15 = sadd.s32 1, %s377_s13  ;;  %p324_p0 = scmp.ge.s32.totalorder %s381_s14, 1  ;;  %s381_s14 = sphi %s408_s14, %s13_s14   ;;  %s377_s13 = sphi %s406_s13, %s448_s13   ;;  %s373_s12 = sphi %s404_s12, %s447_s12  }
   0x3   : > { %p27_p1 = scmp.ge.s32.totalorder %s25_s15, 2  ;;  %p158_p2 = scmp.lt.s32.totalorder %s381_s14, 3 }
   0x5   : > { %s450_s15 = smov (%p27_p1, %s25_s15), 0  ;;  %p159_p3 = pnand %p324_p0, %p158_p2 }
   0x6   : > { %p191_p4 = scmp.lt.s32.totalorder (!%p159_p3), %s373_s12, 1 }
   0x7   : > { %162 = sbr.rel (%p159_p3) target bundleno = 147 (0x93), region = 32 }
   0xc   : > { %v213_v0 = vld [vmem:[%s444_s1] sm:$0xff]  ;;  %v383_v1 = vmov 0   ;;  %s452_s12 = smov (!%p191_p4, %s373_s12), 1 }
   0xd   : > { %358 = vset.pattern.permute.xlu0 %v383_v1  ;;  %v221_v2 = vld [vmem:[%s445_s2] sm:$0xff]  ;;  %s331_s20 = sshll.u32 %s452_s12, 3  ;;  %s332_s24 = sshll.u32 %s452_s12, 4 }
   0xe   : > { %216 = vperm.xlu0 %358, %v213_v0   ;;  %s198_s23 = scalar_lea.vmem %s443_s0, %s331_s20  ;;  %s208_s27 = scalar_lea.vmem %s446_s3, %s332_s24 }
   0xf   : > { %v210_v3 = vld [vmem:[%s198_s23] sm:$0xff] }
  0x10   : > { %v211_v4 = vunpack.c.l.bf16 %v210_v3  ;;  %v212_v5 = vunpack.c.h.bf16 %v210_v3 }
  0x12   : > { %224 = vperm.xlu0 %358, %v221_v2  }
  0x89   : > { %v217_v6 = vpop.permute.xlu0 %216 }
  0x8a   : > { %v219_v7 = vmul.f32 %v217_v6, %v211_v4  ;;  %v220_v8 = vmul.f32 %v217_v6, %v212_v5 }
  0x8d   : > { %v225_v9 = vpop.permute.xlu0 %224 }
  0x8e   : > { %v227_v10 = vadd.f32 %v225_v9, %v219_v7  ;;  %v228_v11 = vadd.f32 %v225_v9, %v220_v8 }
  0x90   : > { %v229_v12 = vmax.f32 %v227_v10, 0.0  ;;  %v230_v13 = vmax.f32 %v228_v11, 0.0 }
  0x92   : > { %231 = vst [vmem:[%s208_s27] sm:$0xff] %v229_v12  ;;  %232 = vst [vmem:[%s208_s27 + $0x8] sm:$0xff] %v230_v13 }
  0x93 PF: > { %s13_s14 = sadd.s32 1, %s381_s14   ;;  %s447_s12 = smov %s377_s13 }
  0x94   : > { %p10_p5 = scmp.ge.s32.totalorder %s13_s14, 4   ;;  %s448_s13 = smov %s450_s15 }
  0x96   :  { %12 = sbr.rel (!%p10_p5) target bundleno = 2 (0x2), region = 62 }

// kernel: basic_block.2
= control target key start
LH: loop header
LB: loop body
LE: loop exit
PB: predicated region body
PF: predicated region fallthrough
CT: control target
= control target key end

     0   :  { %s2062_s12 = smov 0   ;;  %s2064_s13 = smov 0   ;;  %s2406_s0 = inlined_call_operand.vmem [shape: bf16[2,1,4,384], index: 0, kind: input, shape index: {}]   ;;  %s2407_s1 = inlined_call_operand.vmem [shape: bf16[9,8,4], index: 1, kind: input, shape index: {}]   ;;  %s2408_s2 = inlined_call_operand.vmem [shape: bf16[2,8,256], index: 2, kind: output, shape index: {0}]   ;;  %s2409_s3 = inlined_call_operand.vmem [shape: f32[2,1,8,2], index: 3, kind: output, shape index: {1}]  }
   0x1   :  { %s2066_s14 = smov 0  }
   0x2 LB: > { %s26_s15 = sadd.s32 1, %s2001_s13  ;;  %p1790_p0 = scmp.ge.s32.totalorder %s2005_s14, 1  ;;  %s2005_s14 = sphi %s2066_s14, %s14_s14   ;;  %s2001_s13 = sphi %s2064_s13, %s2411_s13   ;;  %s1997_s12 = sphi %s2062_s12, %s2410_s12  }
   0x3   : > { %p28_p1 = scmp.ge.s32.totalorder %s26_s15, 2  ;;  %p162_p2 = scmp.lt.s32.totalorder %s2005_s14, 3 }
   0x5   : > { %s2413_s15 = smov (%p28_p1, %s26_s15), 0  ;;  %p163_p3 = pnand %p1790_p0, %p162_p2 }
   0x6   : > { %p201_p4 = scmp.lt.s32.totalorder (!%p163_p3), %s1997_s12, 1  ;;  %s2011_s20 = smov (!%p163_p3), 127  }
   0x7   : > { %166 = sbr.rel (%p163_p3) target bundleno = 1368 (0x558), region = 28  ;;  %s2012_s21 = smov (!%p163_p3), 126  }
   0x8   : > { %s2013_s22 = smov (!%p163_p3), 110   ;;  %s2014_s23 = smov (!%p163_p3), 109  }
   0x9   : > { %s2015_s24 = smov (!%p163_p3), 108   ;;  %s2016_s25 = smov (!%p163_p3), 92  }
   0xa   : > { %s2017_s26 = smov (!%p163_p3), 91   ;;  %s2018_s27 = smov (!%p163_p3), 90  }
   0xb   : > { %s2019_s4 = smov (!%p163_p3), 20   ;;  %s2020_s5 = smov (!%p163_p3), 74  }
   0xc   : > { %v237_v0 = vlaneseq  ;;  %v2007_v1 = vmov 1983009808   ;;  %v2008_v3 = vmov 0.0   ;;  %s2415_s12 = smov (!%p201_p4, %s1997_s12), 1  ;;  %v2009_v6 = vmov 0   ;;  %s2021_s6 = smov 56  }
   0xd   : > { %v235_v2 = vunpack.c.l.s4 %v2007_v1  ;;  %1861 = vmatprep.subr.bf16.mxu1 %v2008_v3  ;;  %s1915_s16 = smul.u32 6, %s2415_s12  ;;  %304 = vmatprep.mubr.bf16.mxu0 %v2009_v6  ;;  %vm2010_vm0 = vmmov 0   ;;  %vm262_vm1 = vcmask 1041408   ;;  %vm255_vm2 = vcmask 1039360   ;;  %v1795_v56 = vld [vmem:[%s2407_s1 + $0x4] sm:$0xf] }
   0xe   : > { %v238_v4 = vshrl.u32 %v237_v0, 7  ;;  %1863 = vmatprep.mubr.msk.bf16.mxu1 %vm2010_vm0, %v2008_v3  ;;  %vm258_vm3 = vcmask 31744   ;;  %vm472_vm4 = vcmask 1031168   ;;  %v229_v1 = vld [vmem:[%s2407_s1] sm:$0xf]  ;;  %vm597_vm5 = vcmask 900096  }
   0xf   : > { %v236_v5 = vunpack.c.0.s8 %v235_v2  ;;  %s2092_s19 = scalar_lea.vmem %s2406_s0, %s1915_s16  ;;  %vm722_vm6 = vcmask 891904   ;;  %vm847_vm7 = vcmask 883712   ;;  %vm972_vm8 = vcmask 752640   ;;  %s2022_s7 = smov 38  }
  0x10   : > { %v228_v8 = vld [vmem:[%s2092_s19] sm:$0x3f]  ;;  %vm1097_vm9 = vcmask 744448   ;;  %vm1222_vm10 = vcmask 736256   ;;  %vm1322_vm11 = vcmask 125952   ;;  %s2023_s8 = smov 2  }
  0x11   : > { %v2087_v7 = vsub.s32 %v236_v5, %v238_v4  ;;  %v233_v10 = vcombine.high %v228_v8, %v228_v8  ;;  %v446_v11 = vld [vmem:[%s2092_s19] sm:$0x3f]  ;;  %vm1324_vm12 = vcmask 130048   ;;  %s2024_s9 = smov 94   ;;  %s2025_s10 = smov 124   ;;  %vm1340_vm13 = vcmask 257152  }
  0x12   : > { %v450_v15 = vcombine.high %v446_v11, %v446_v11  ;;  %v571_v17 = vld [vmem:[%s2092_s19] sm:$0x3f]  ;;  %s2027_s11 = smov 120   ;;  %s2028_s16 = smov 118   ;;  %vm1361_vm14 = vcmask 388352   ;;  %vm1380_vm15 = vcmask 519552  }
  0x13   : > { %v2096_v9 = vrot.slane %v228_v8, %v2087_v7  ;;  %v2105_v13 = vrot.slane %v233_v10, %v2087_v7  ;;  %v457_v14 = vrot.slane %v446_v11, %v2087_v7  ;;  %v582_v19 = vrot.slane %v571_v17, %v2087_v7  ;;  %v696_v22 = vld [vmem:[%s2092_s19] sm:$0x3f]  ;;  %s2029_s17 = smov 116   ;;  %s2030_s18 = smov 112  }
  0x14   : > { %v464_v18 = vrot.slane %v450_v15, %v2087_v7  ;;  %v575_v20 = vcombine.high %v571_v17, %v571_v17  ;;  %v707_v24 = vrot.slane %v696_v22, %v2087_v7  ;;  %v700_v25 = vcombine.high %v696_v22, %v696_v22  ;;  %v821_v27 = vld [vmem:[%s2092_s19] sm:$0x3f]  ;;  %s2038_s28 = smov 22   ;;  %s2039_s29 = smov 4  }
  0x15   : > { %249 = vrot.lane.b32.xlu0 %v2096_v9, %s2011_s20  ;;  %v2102_v12 = vcombine.high %v2096_v9, %v2096_v9  ;;  %253 = vrot.lane.b32.xlu1 %v2105_v13, %s2011_s20  ;;  %v465_v16 = vcombine.high %v457_v14, %v457_v14  ;;  %v590_v21 = vcombine.high %v582_v19, %v582_v19  ;;  %v946_v32 = vld [vmem:[%s2092_s19] sm:$0x3f]  ;;  %v363_v54 = vsel %vm262_vm1, %v2105_v13, 0 }
  0x16   : > { %v589_v23 = vrot.slane %v575_v20, %v2087_v7  ;;  %v715_v26 = vcombine.high %v707_v24, %v707_v24  ;;  %v714_v28 = vrot.slane %v700_v25, %v2087_v7  ;;  %v832_v29 = vrot.slane %v821_v27, %v2087_v7  ;;  %v1071_v37 = vld [vmem:[%s2092_s19] sm:$0x3f]  ;;  %v1806_v20 = vld [vmem:[%s2407_s1 + $0xc] sm:$0xf] }
  0x17   : > { %v825_v30 = vcombine.high %v821_v27, %v821_v27  ;;  %v957_v34 = vrot.slane %v946_v32, %v2087_v7  ;;  %v950_v35 = vcombine.high %v946_v32, %v946_v32  ;;  %v1082_v39 = vrot.slane %v1071_v37, %v2087_v7  ;;  %v1196_v42 = vld [vmem:[%s2092_s19] sm:$0x3f]  ;;  %s2032_s19 = smov 114  }
  0x18   : > { %v840_v31 = vcombine.high %v832_v29, %v832_v29  ;;  %v1075_v40 = vcombine.high %v1071_v37, %v1071_v37  ;;  %v1207_v44 = vrot.slane %v1196_v42, %v2087_v7  ;;  %v1200_v45 = vcombine.high %v1196_v42, %v1196_v42 }
  0x19   : > { %251 = vrot.lane.b32.xlu0 %v2102_v12, %s2011_s20  ;;  %466 = vrot.lane.b32.xlu1 %v457_v14, %s2012_s21  ;;  %v839_v33 = vrot.slane %v825_v30, %v2087_v7  ;;  %v965_v36 = vcombine.high %v957_v34, %v957_v34  ;;  %v964_v38 = vrot.slane %v950_v35, %v2087_v7  ;;  %v357_v58 = vsel %vm262_vm1, %v2096_v9, 0  ;;  %s2033_s20 = smov 106  }
  0x1a   : > { %v1090_v41 = vcombine.high %v1082_v39, %v1082_v39  ;;  %v1089_v43 = vrot.slane %v1075_v40, %v2087_v7  ;;  %v1215_v46 = vcombine.high %v1207_v44, %v1207_v44  ;;  %v1214_v47 = vrot.slane %v1200_v45, %v2087_v7 }
  0x1d   : > { %468 = vrot.lane.b32.xlu0 %v465_v16, %s2012_s21  ;;  %470 = vrot.lane.b32.xlu1 %v464_v18, %s2012_s21 }
  0x21   : > { %591 = vrot.lane.b32.xlu0 %v582_v19, %s2013_s22  ;;  %593 = vrot.lane.b32.xlu1 %v590_v21, %s2013_s22 }
  0x25   : > { %595 = vrot.lane.b32.xlu0 %v589_v23, %s2013_s22  ;;  %716 = vrot.lane.b32.xlu1 %v707_v24, %s2014_s23 }
  0x29   : > { %718 = vrot.lane.b32.xlu0 %v715_v26, %s2014_s23  ;;  %720 = vrot.lane.b32.xlu1 %v714_v28, %s2014_s23  ;;  %v1810_v28 = vld [vmem:[%s2407_s1 + $0x10] sm:$0xf]  ;;  %s2036_s23 = smov 40  }
  0x2d   : > { %841 = vrot.lane.b32.xlu0 %v832_v29, %s2015_s24  ;;  %843 = vrot.lane.b32.xlu1 %v840_v31, %s2015_s24 }
  0x31   : > { %845 = vrot.lane.b32.xlu0 %v839_v33, %s2015_s24  ;;  %966 = vrot.lane.b32.xlu1 %v957_v34, %s2016_s25 }
  0x35   : > { %968 = vrot.lane.b32.xlu0 %v965_v36, %s2016_s25  ;;  %970 = vrot.lane.b32.xlu1 %v964_v38, %s2016_s25  ;;  %v1814_v36 = vld [vmem:[%s2407_s1 + $0x14] sm:$0xf] }
  0x39   : > { %1091 = vrot.lane.b32.xlu0 %v1082_v39, %s2017_s26  ;;  %1093 = vrot.lane.b32.xlu1 %v1090_v41, %s2017_s26 }
  0x3d   : > { %1095 = vrot.lane.b32.xlu0 %v1089_v43, %s2017_s26  ;;  %1216 = vrot.lane.b32.xlu1 %v1207_v44, %s2018_s27  ;;  %v1818_v43 = vld [vmem:[%s2407_s1 + $0x18] sm:$0xf]  ;;  %s2037_s26 = smov 102  }
  0x41   : > { %1218 = vrot.lane.b32.xlu0 %v1215_v46, %s2018_s27  ;;  %1220 = vrot.lane.b32.xlu1 %v1214_v47, %s2018_s27  ;;  %s1837_s27 = sshll.u32 %s2415_s12, 3 }
  0x42   : > { %s2258_s30 = scalar_lea.vmem %s2408_s2, %s1837_s27 }
  0x87   : > { %v250_v48 = vpop.permute.xlu0 %249  ;;  %v254_v49 = vpop.permute.xlu1 %253 }
  0x88   : > { %v270_v50 = vsel %vm262_vm1, %v254_v49, 0 }
  0x89   : > { %1862 = vmatpush3.bf16.msra.mxu1 %v270_v50  ;;  %v1822_v50 = vld [vmem:[%s2407_s1 + $0x1c] sm:$0xf] }
  0x8a   : > { %1867 = vmatprep.subr.bf16.mxu1 %v2008_v3 }
  0x8b   : > { %v252_v51 = vpop.permute.xlu0 %251  ;;  %v467_v57 = vpop.permute.xlu1 %466 }
  0x8c   : > { %v257_v52 = vsel %vm255_vm2, %v252_v51, %v254_v49  ;;  %v256_v53 = vsel %vm255_vm2, %v250_v48, %v252_v51  ;;  %1864 = vmatmul.mubr.msk.bf16.vlgmr.msra.gmra.mxu1 %vm258_vm3, %v1795_v56  ;;  %vm1437_vm2 = vcmask 913152  }
  0x8d   : > { %1796 = vmatprep.subr.msk.bf16.mxu0 %vm262_vm1, %v257_v52  ;;  %v264_v55 = vsel %vm262_vm1, %v256_v53, 0  ;;  %1868 = vmatpush3.bf16.msra.mxu1 %v363_v54  ;;  %v1826_v52 = vld [vmem:[%s2407_s1 + $0x20] sm:$0xf] }
  0x8e   : > { %287 = vmatpush1.bf16.msra.mxu0 %v264_v55  ;;  %1869 = vmatprep.mubr.msk.bf16.mxu1 %vm2010_vm0, %v2008_v3 }
  0x8f   : > { %1799 = vmatprep.subr.msk.bf16.mxu0 %vm262_vm1, %v2102_v12  ;;  %v469_v59 = vpop.permute.xlu0 %468  ;;  %1873 = vmatprep.subr.bf16.mxu1 %v2008_v3  ;;  %v471_v60 = vpop.permute.xlu1 %470  ;;  %v1802_v12 = vld [vmem:[%s2407_s1 + $0x8] sm:$0xf] }
  0x90   : > { %v474_v61 = vsel %vm472_vm4, %v469_v59, %v471_v60  ;;  %v473_v63 = vsel %vm472_vm4, %v467_v57, %v469_v59  ;;  %v485_v0 = vsel %vm262_vm1, %v471_v60, 0  ;;  %vm1470_vm4 = vcmask 15360  }
  0x91   : > { %1797 = vmatmul.mubr.msk.bf16.vlgmr.msra.gmra.mxu0 %vm258_vm3, %v1795_v56  ;;  %v479_v4 = vsel %vm262_vm1, %v473_v63, 0 }
  0x92   : > { %380 = vmatpush1.bf16.msra.mxu0 %v357_v58  ;;  %397 = vmatprep.mubr.bf16.mxu0 %v2009_v6 }
  0x93   : > { %1803 = vmatprep.subr.msk.bf16.mxu0 %vm262_vm1, %v474_v61  ;;  %v592_v62 = vpop.permute.xlu0 %591  ;;  %v594_v2 = vpop.permute.xlu1 %593 }
  0x94   : > { %1870 = vmatmul.mubr.msk.bf16.vlgmr.msra.gmra.mxu1 %vm258_vm3, %v229_v1  ;;  %v598_v10 = vsel %vm597_vm5, %v592_v62, %v594_v2 }
  0x95   : > { %1874 = vmatpush3.bf16.msra.mxu1 %v485_v0  ;;  %1875 = vmatprep.mubr.msk.bf16.mxu1 %vm2010_vm0, %v2008_v3  ;;  %v604_v14 = vsel %vm262_vm1, %v598_v10, 0 }
  0x96   : > { %1879 = vmatprep.subr.bf16.mxu1 %v2008_v3 }
  0x97   : > { %v596_v5 = vpop.permute.xlu0 %595  ;;  %v717_v8 = vpop.permute.xlu1 %716 }
  0x98   : > { %v599_v7 = vsel %vm597_vm5, %v594_v2, %v596_v5  ;;  %v610_v11 = vsel %vm262_vm1, %v596_v5, 0  ;;  %vm1460_vm5 = vcmask 932864  }
  0x99   : > { %1800 = vmatmul.mubr.msk.bf16.vlgmr.msra.gmra.mxu0 %vm258_vm3, %v229_v1 }
  0x9a   : > { %502 = vmatpush1.bf16.msra.mxu0 %v479_v4  ;;  %519 = vmatprep.mubr.bf16.mxu0 %v2009_v6 }
  0x9b   : > { %1807 = vmatprep.subr.msk.bf16.mxu0 %vm262_vm1, %v599_v7  ;;  %v719_v9 = vpop.permute.xlu0 %718  ;;  %v721_v13 = vpop.permute.xlu1 %720 }
  0x9c   : > { %1876 = vmatmul.mubr.msk.bf16.vlgmr.msra.gmra.mxu1 %vm258_vm3, %v1802_v12  ;;  %v724_v16 = vsel %vm722_vm6, %v719_v9, %v721_v13  ;;  %v723_v18 = vsel %vm722_vm6, %v717_v8, %v719_v9  ;;  %v735_v19 = vsel %vm262_vm1, %v721_v13, 0  ;;  %vm1463_vm6 = vcmask 1044352  }
  0x9d   : > { %1880 = vmatpush3.bf16.msra.mxu1 %v610_v11  ;;  %1881 = vmatprep.mubr.msk.bf16.mxu1 %vm2010_vm0, %v2008_v3  ;;  %v729_v22 = vsel %vm262_vm1, %v723_v18, 0 }
  0x9e   : > { %1885 = vmatprep.subr.bf16.mxu1 %v2008_v3 }
  0x9f   : > { %v842_v15 = vpop.permute.xlu0 %841  ;;  %v844_v17 = vpop.permute.xlu1 %843 }
  0xa0   : > { %v848_v26 = vsel %vm847_vm7, %v842_v15, %v844_v17 }
  0xa1   : > { %1804 = vmatmul.mubr.msk.bf16.vlgmr.msra.gmra.mxu0 %vm258_vm3, %v1802_v12  ;;  %v854_v30 = vsel %vm262_vm1, %v848_v26, 0 }
  0xa2   : > { %627 = vmatpush1.bf16.msra.mxu0 %v604_v14  ;;  %644 = vmatprep.mubr.bf16.mxu0 %v2009_v6 }
  0xa3   : > { %1811 = vmatprep.subr.msk.bf16.mxu0 %vm262_vm1, %v724_v16  ;;  %v846_v21 = vpop.permute.xlu0 %845  ;;  %v967_v23 = vpop.permute.xlu1 %966 }
  0xa4   : > { %1882 = vmatmul.mubr.msk.bf16.vlgmr.msra.gmra.mxu1 %vm258_vm3, %v1806_v20  ;;  %v849_v24 = vsel %vm847_vm7, %v844_v17, %v846_v21  ;;  %v860_v27 = vsel %vm262_vm1, %v846_v21, 0  ;;  %vm1605_vm7 = vcmask 818176  }
  0xa5   : > { %1886 = vmatpush3.bf16.msra.mxu1 %v735_v19  ;;  %1887 = vmatprep.mubr.msk.bf16.mxu1 %vm2010_vm0, %v2008_v3 }
  0xa6   : > { %1891 = vmatprep.subr.bf16.mxu1 %v2008_v3 }
  0xa7   : > { %v969_v25 = vpop.permute.xlu0 %968  ;;  %v971_v29 = vpop.permute.xlu1 %970 }
  0xa8   : > { %v974_v32 = vsel %vm972_vm8, %v969_v25, %v971_v29  ;;  %v973_v34 = vsel %vm972_vm8, %v967_v23, %v969_v25  ;;  %v985_v35 = vsel %vm262_vm1, %v971_v29, 0  ;;  %vm1653_vm8 = vcmask 15368  }
  0xa9   : > { %1808 = vmatmul.mubr.msk.bf16.vlgmr.msra.gmra.mxu0 %vm258_vm3, %v1806_v20  ;;  %v979_v38 = vsel %vm262_vm1, %v973_v34, 0 }
  0xaa   : > { %752 = vmatpush1.bf16.msra.mxu0 %v729_v22  ;;  %769 = vmatprep.mubr.bf16.mxu0 %v2009_v6 }
  0xab   : > { %1815 = vmatprep.subr.msk.bf16.mxu0 %vm262_vm1, %v849_v24  ;;  %v1092_v31 = vpop.permute.xlu0 %1091  ;;  %v1094_v33 = vpop.permute.xlu1 %1093 }
  0xac   : > { %1888 = vmatmul.mubr.msk.bf16.vlgmr.msra.gmra.mxu1 %vm258_vm3, %v1810_v28  ;;  %v1098_v41 = vsel %vm1097_vm9, %v1092_v31, %v1094_v33 }
  0xad   : > { %1892 = vmatpush3.bf16.msra.mxu1 %v860_v27  ;;  %1893 = vmatprep.mubr.msk.bf16.mxu1 %vm2010_vm0, %v2008_v3  ;;  %v1104_v46 = vsel %vm262_vm1, %v1098_v41, 0 }
  0xae   : > { %1897 = vmatprep.subr.bf16.mxu1 %v2008_v3 }
  0xaf   : > { %v1096_v37 = vpop.permute.xlu0 %1095  ;;  %v1217_v39 = vpop.permute.xlu1 %1216 }
  0xb0   : > { %v1099_v40 = vsel %vm1097_vm9, %v1094_v33, %v1096_v37  ;;  %v1110_v42 = vsel %vm262_vm1, %v1096_v37, 0 }
  0xb1   : > { %1812 = vmatmul.mubr.msk.bf16.vlgmr.msra.gmra.mxu0 %vm258_vm3, %v1810_v28 }
  0xb2   : > { %877 = vmatpush1.bf16.msra.mxu0 %v854_v30  ;;  %894 = vmatprep.mubr.bf16.mxu0 %v2009_v6 }
  0xb3   : > { %1819 = vmatprep.subr.msk.bf16.mxu0 %vm262_vm1, %v974_v32  ;;  %v1219_v44 = vpop.permute.xlu0 %1218  ;;  %v1221_v45 = vpop.permute.xlu1 %1220 }
  0xb4   : > { %1894 = vmatmul.mubr.msk.bf16.vlgmr.msra.gmra.mxu1 %vm258_vm3, %v1814_v36  ;;  %v1224_v47 = vsel %vm1222_vm10, %v1219_v44, %v1221_v45  ;;  %v1223_v48 = vsel %vm1222_vm10, %v1217_v39, %v1219_v44  ;;  %v1235_v49 = vsel %vm262_vm1, %v1221_v45, 0 }
  0xb5   : > { %1898 = vmatpush3.bf16.msra.mxu1 %v985_v35  ;;  %1899 = vmatprep.mubr.msk.bf16.mxu1 %vm2010_vm0, %v2008_v3  ;;  %v1229_v51 = vsel %vm262_vm1, %v1223_v48, 0 }
  0xb6   : > { %1903 = vmatprep.subr.bf16.mxu1 %v2008_v3 }
  0xb9   : > { %1816 = vmatmul.mubr.msk.bf16.vlgmr.msra.gmra.mxu0 %vm258_vm3, %v1814_v36 }
  0xba   : > { %1002 = vmatpush1.bf16.msra.mxu0 %v979_v38  ;;  %1019 = vmatprep.mubr.bf16.mxu0 %v2009_v6 }
  0xbb   : > { %1823 = vmatprep.subr.msk.bf16.mxu0 %vm262_vm1, %v1099_v40 }
  0xbc   : > { %1900 = vmatmul.mubr.msk.bf16.vlgmr.msra.gmra.mxu1 %vm258_vm3, %v1818_v43 }
  0xbd   : > { %1904 = vmatpush3.bf16.msra.mxu1 %v1110_v42  ;;  %1905 = vmatprep.mubr.msk.bf16.mxu1 %vm2010_vm0, %v2008_v3 }
  0xbe   : > { %1909 = vmatprep.subr.bf16.mxu1 %v2008_v3 }
  0xc1   : > { %1820 = vmatmul.mubr.msk.bf16.vlgmr.msra.gmra.mxu0 %vm258_vm3, %v1818_v43 }
  0xc2   : > { %1127 = vmatpush1.bf16.msra.mxu0 %v1104_v46  ;;  %1144 = vmatprep.mubr.bf16.mxu0 %v2009_v6 }
  0xc3   : > { %1827 = vmatprep.subr.msk.bf16.mxu0 %vm262_vm1, %v1224_v47  ;;  %vm1418_vm1 = vcmask 781952  }
  0xc4   : > { %1906 = vmatmul.mubr.msk.bf16.vlgmr.msra.gmra.mxu1 %vm258_vm3, %v1822_v50 }
  0xc5   : > { %1910 = vmatpush3.bf16.msra.mxu1 %v1235_v49  ;;  %1911 = vmatprep.mubr.msk.bf16.mxu1 %vm2010_vm0, %v2008_v3  ;;  %vm1399_vm0 = vcmask 650752  }
  0xc9   : > { %1824 = vmatmul.mubr.msk.bf16.vlgmr.msra.gmra.mxu0 %vm258_vm3, %v1822_v50 }
  0xca   : > { %1252 = vmatpush1.bf16.msra.mxu0 %v1229_v51  ;;  %1269 = vmatprep.mubr.bf16.mxu0 %v2009_v6 }
  0xcc   : > { %1912 = vmatmul.mubr.msk.bf16.vlgmr.msra.gmra.mxu1 %vm258_vm3, %v1826_v52 }
  0xd1   : > { %1828 = vmatmul.mubr.msk.bf16.vlgmr.msra.gmra.mxu0 %vm258_vm3, %v1826_v52 }
 0x14c   : > { %v347_v53 = vpop.f32.mrf.mxu1 }
 0x14e   : > { %v1865_v54 = vpop.f32.mrf.mxu1 }
 0x150   : > { %v350_v56 = vpop.f32.mrf.mxu1 }
 0x151   : > { %v306_v55 = vpop.f32.mrf.mxu0 }
 0x152   : > { %v1866_v58 = vpop.f32.mrf.mxu1 }
 0x153   : > { %v308_v57 = vpop.f32.mrf.mxu0 }
 0x154   : > { %v440_v59 = vpop.f32.mrf.mxu1 }
 0x155   : > { %v310_v3 = vpop.f32.mrf.mxu0  ;;  %v441_v61 = vadd.f32 %v440_v59, %v347_v53 }
 0x156   : > { %v1871_v62 = vpop.f32.mrf.mxu1 }
 0x157   : > { %v311_v60 = vpop.f32.mrf.mxu0 }
 0x158   : > { %v443_v63 = vpop.f32.mrf.mxu1 }
 0x159   : > { %v399_v6 = vpop.f32.mrf.mxu0 }
 0x15a   : > { %v1872_v2 = vpop.f32.mrf.mxu1  ;;  %v400_v53 = vadd.f32 %v399_v6, %v306_v55 }
 0x15b   : > { %v401_v0 = vpop.f32.mrf.mxu0 }
 0x15c   : > { %v402_v1 = vadd.f32 %v401_v0, %v308_v57  ;;  %v562_v5 = vpop.f32.mrf.mxu1 }
 0x15d   : > { %v403_v4 = vpop.f32.mrf.mxu0  ;;  %v570_v8 = vadd.f32 %v562_v5, %v441_v61 }
 0x15e   : > { %v1877_v9 = vpop.f32.mrf.mxu1 }
 0x15f   : > { %v404_v7 = vpop.f32.mrf.mxu0 }
 0x160   : > { %v565_v11 = vpop.f32.mrf.mxu1 }
 0x161   : > { %v521_v10 = vpop.f32.mrf.mxu0 }
 0x162   : > { %v1878_v14 = vpop.f32.mrf.mxu1  ;;  %v568_v57 = vadd.f32 %v521_v10, %v400_v53 }
 0x163   : > { %v523_v12 = vpop.f32.mrf.mxu0 }
 0x164   : > { %v569_v13 = vadd.f32 %v523_v12, %v402_v1  ;;  %v687_v16 = vpop.f32.mrf.mxu1 }
 0x165   : > { %v525_v15 = vpop.f32.mrf.mxu0  ;;  %v695_v18 = vadd.f32 %v687_v16, %v570_v8 }
 0x166   : > { %v1883_v19 = vpop.f32.mrf.mxu1 }
 0x167   : > { %v526_v17 = vpop.f32.mrf.mxu0 }
 0x168   : > { %v690_v21 = vpop.f32.mrf.mxu1 }
 0x169   : > { %v646_v20 = vpop.f32.mrf.mxu0 }
 0x16a   : > { %v1884_v24 = vpop.f32.mrf.mxu1  ;;  %v693_v60 = vadd.f32 %v646_v20, %v568_v57 }
 0x16b   : > { %v648_v22 = vpop.f32.mrf.mxu0 }
 0x16c   : > { %v694_v23 = vadd.f32 %v648_v22, %v569_v13  ;;  %v812_v26 = vpop.f32.mrf.mxu1 }
 0x16d   : > { %v650_v25 = vpop.f32.mrf.mxu0  ;;  %v820_v28 = vadd.f32 %v812_v26, %v695_v18 }
 0x16e   : > { %v1889_v29 = vpop.f32.mrf.mxu1 }
 0x16f   : > { %v651_v27 = vpop.f32.mrf.mxu0 }
 0x170   : > { %v815_v31 = vpop.f32.mrf.mxu1 }
 0x171   : > { %v771_v30 = vpop.f32.mrf.mxu0 }
 0x172   : > { %v1890_v34 = vpop.f32.mrf.mxu1  ;;  %v818_v63 = vadd.f32 %v771_v30, %v693_v60 }
 0x173   : > { %v773_v32 = vpop.f32.mrf.mxu0 }
 0x174   : > { %v819_v33 = vadd.f32 %v773_v32, %v694_v23  ;;  %v937_v36 = vpop.f32.mrf.mxu1 }
 0x175   : > { %v775_v35 = vpop.f32.mrf.mxu0  ;;  %v945_v38 = vadd.f32 %v937_v36, %v820_v28 }
 0x176   : > { %v1895_v39 = vpop.f32.mrf.mxu1 }
 0x177   : > { %v776_v37 = vpop.f32.mrf.mxu0 }
 0x178   : > { %v940_v41 = vpop.f32.mrf.mxu1 }
 0x179   : > { %v896_v40 = vpop.f32.mrf.mxu0 }
 0x17a   : > { %v1896_v44 = vpop.f32.mrf.mxu1  ;;  %v943_v2 = vadd.f32 %v896_v40, %v818_v63 }
 0x17b   : > { %v898_v42 = vpop.f32.mrf.mxu0 }
 0x17c   : > { %v2248_v43 = vadd.f32 %v898_v42, %v819_v33  ;;  %v1062_v46 = vpop.f32.mrf.mxu1 }
 0x17d   : > { %v900_v45 = vpop.f32.mrf.mxu0  ;;  %v1070_v48 = vadd.f32 %v1062_v46, %v945_v38 }
 0x17e   : > { %v1901_v49 = vpop.f32.mrf.mxu1 }
 0x17f   : > { %v901_v47 = vpop.f32.mrf.mxu0 }
 0x180   : > { %v1065_v51 = vpop.f32.mrf.mxu1 }
 0x181   : > { %v1021_v50 = vpop.f32.mrf.mxu0 }
 0x182   : > { %v1902_v54 = vpop.f32.mrf.mxu1  ;;  %v1068_v7 = vadd.f32 %v1021_v50, %v943_v2 }
 0x183   : > { %v1023_v52 = vpop.f32.mrf.mxu0 }
 0x184   : > { %v1187_v58 = vpop.f32.mrf.mxu1  ;;  %v1069_v21 = vadd.f32 %v1023_v52, %v2248_v43 }
 0x185   : > { %v1025_v56 = vpop.f32.mrf.mxu0  ;;  %v1195_v59 = vadd.f32 %v1187_v58, %v1070_v48 }
 0x186   : > { %v1907_v61 = vpop.f32.mrf.mxu1 }
 0x187   : > { %v1026_v3 = vpop.f32.mrf.mxu0 }
 0x188   : > { %v1190_v0 = vpop.f32.mrf.mxu1 }
 0x189   : > { %v1146_v62 = vpop.f32.mrf.mxu0 }
 0x18a   : > { %v1908_v4 = vpop.f32.mrf.mxu1  ;;  %v1193_v9 = vadd.f32 %v1146_v62, %v1068_v7 }
 0x18b   : > { %v1148_v1 = vpop.f32.mrf.mxu0 }
 0x18c   : > { %v1312_v8 = vpop.f32.mrf.mxu1  ;;  %v1194_v22 = vadd.f32 %v1148_v1, %v1069_v21 }
 0x18d   : > { %v1150_v5 = vpop.f32.mrf.mxu0  ;;  %v2250_v6 = vadd.f32 %v1312_v8, %v1195_v59 }
 0x18e   : > { %v1913_v10 = vpop.f32.mrf.mxu1 }
 0x18f   : > { %v1151_v55 = vpop.f32.mrf.mxu0 }
 0x190   : > { %v1315_v13 = vpop.f32.mrf.mxu1 }
 0x191   : > { %v1271_v11 = vpop.f32.mrf.mxu0 }
 0x192   : > { %v1318_v12 = vadd.f32 %v1271_v11, %v1193_v9  ;;  %v1914_v16 = vpop.f32.mrf.mxu1 }
 0x193   : > { %v1273_v14 = vpop.f32.mrf.mxu0 }
 0x194   : > { %1439 = vrot.lane.b32.xlu0 %v1318_v12, %s2019_s4  ;;  %1343 = vrot.lane.b32.xlu1 %v1318_v12, %s2013_s22  ;;  %v1321_v15 = vpack.c.bf16 %v1318_v12, %v1318_v12  ;;  %v1329_v19 = vmul.f32 %v1318_v12, %v1318_v12  ;;  %v1325_v20 = vsel %vm1324_vm12, %v1318_v12, 0.0  ;;  %v2271_v23 = vadd.f32 %v1273_v14, %v1194_v22 }
 0x195   : > { %v1275_v17 = vpop.f32.mrf.mxu0 }
 0x196   : > { %1323 = vst.msk [vmem:[%s2258_s30] sm:$0xf] %vm1322_vm11, %v1321_v15  ;;  %v1330_v24 = vsel %vm1324_vm12, %v1329_v19, 0.0  ;;  %v1839_v25 = vpack.c.bf16 %v2271_v23, %v1318_v12  ;;  %v2285_v26 = vpack.c.bf16 %v2271_v23, %v2271_v23  ;;  %v2290_v27 = vmul.f32 %v2271_v23, %v2271_v23 }
 0x197   : > { %v1276_v18 = vpop.f32.mrf.mxu0 }
 0x198   : > { %1363 = vrot.lane.b32.xlu1 %v1318_v12, %s2016_s25 }
 0x19c   : > { %1382 = vrot.lane.b32.xlu1 %v1318_v12, %s2020_s5 }
 0x1a0   : > { %1401 = vrot.lane.b32.xlu1 %v1318_v12, %s2021_s6 }
 0x1a4   : > { %1420 = vrot.lane.b32.xlu1 %v1318_v12, %s2022_s7 }
 0x1a8   : > { %1466 = vrot.lane.b32.xlu1 %v1318_v12, %s2023_s8 }
 0x1ac   : > { %1351 = vrot.lane.b32.xlu1 %v1329_v19, %s2013_s22 }
 0x1b0   : > { %1370 = vrot.lane.b32.xlu1 %v1329_v19, %s2016_s25  ;;  %s2026_s25 = smov 122  }
 0x1b3   : > { %1326 = vadd.xlane.f32.xlu0 %v1325_v20 }
 0x1b4   : > { %1389 = vrot.lane.b32.xlu1 %v1329_v19, %s2020_s5  ;;  %s2041_s5 = smov 98  }
 0x1b8   : > { %1408 = vrot.lane.b32.xlu1 %v1329_v19, %s2021_s6 }
 0x1bc   : > { %1427 = vrot.lane.b32.xlu1 %v1329_v19, %s2022_s7 }
 0x1c0   : > { %1479 = vrot.lane.b32.xlu1 %v1329_v19, %s2023_s8 }
 0x1c4   : > { %1512 = vrot.lane.b32.xlu1 %v2271_v23, %s2024_s9 }
 0x1c9   : > { %1337 = vrot.lane.b32.xlu0 %v1321_v15, %s2012_s21  ;;  %s2031_s21 = smov 76  }
 0x1cd   : > { %1358 = vrot.lane.b32.xlu0 %v1321_v15, %s2025_s10 }
 0x1d1   : > { %1377 = vrot.lane.b32.xlu0 %v1321_v15, %s2026_s25 }
 0x1d5   : > { %1396 = vrot.lane.b32.xlu0 %v1321_v15, %s2027_s11 }
 0x1d9   : > { %1415 = vrot.lane.b32.xlu0 %v1321_v15, %s2028_s16 }
 0x1dd   : > { %1434 = vrot.lane.b32.xlu0 %v1321_v15, %s2029_s17 }
 0x1e1   : > { %1446 = vrot.lane.b32.xlu0 %v1329_v19, %s2019_s4  ;;  %s2040_s4 = smov 100  }
 0x1e5   : > { %1468 = vrot.lane.b32.xlu0 %v2271_v23, %s2023_s8 }
 0x1e8   : > { %1331 = vadd.xlane.f32.xlu1 %v1330_v24 }
 0x1e9   : > { %1494 = vrot.lane.b32.xlu0 %v2271_v23, %s2030_s18 }
 0x1ed   : > { %1530 = vrot.lane.b32.xlu0 %v2271_v23, %s2031_s21 }
 0x1f1   : > { %1457 = vrot.lane.b32.xlu0 %v1839_v25, %s2032_s19 }
 0x1f5   : > { %1490 = vrot.lane.b32.xlu0 %v2285_v26, %s2030_s18 }
 0x1f9   : > { %1481 = vrot.lane.b32.xlu1 %v2290_v27, %s2023_s8  ;;  %1501 = vrot.lane.b32.xlu0 %v2290_v27, %s2030_s18  ;;  %s226_s8 = scalar_lea.vmem %s2409_s3, %s1837_s27 }
 0x1fd   : > { %1519 = vrot.lane.b32.xlu1 %v2290_v27, %s2024_s9  ;;  %1508 = vrot.lane.b32.xlu0 %v2285_v26, %s2013_s22  ;;  %s2034_s22 = smov 58  }
 0x201   : > { %1526 = vrot.lane.b32.xlu0 %v2285_v26, %s2015_s24  ;;  %s2035_s24 = smov 104  }
 0x205   : > { %1537 = vrot.lane.b32.xlu0 %v2290_v27, %s2031_s21 }
 0x206   : > { %v1344_v28 = vpop.permute.xlu1 %1343  ;;  %v1440_v34 = vpop.permute.xlu0 %1439 }
 0x207   : > { %v1442_v36 = vsel %vm1324_vm12, %v1440_v34, 0.0  ;;  %v1346_v40 = vsel %vm1324_vm12, %v1344_v28, 0.0 }
 0x209   : > { %1544 = vrot.lane.b32.xlu0 %v2285_v26, %s2033_s20 }
 0x20a   : > { %v1364_v29 = vpop.permute.xlu1 %1363 }
 0x20b   : > { %v1366_v43 = vsel %vm1324_vm12, %v1364_v29, 0.0 }
 0x20e   : > { %v1383_v30 = vpop.permute.xlu1 %1382 }
 0x20f   : > { %v1385_v46 = vsel %vm1324_vm12, %v1383_v30, 0.0 }
 0x212   : > { %v1402_v31 = vpop.permute.xlu1 %1401 }
 0x213   : > { %v1404_v49 = vsel %vm1324_vm12, %v1402_v31, 0.0 }
 0x216   : > { %v1421_v32 = vpop.permute.xlu1 %1420 }
 0x217   : > { %v1423_v51 = vsel %vm1324_vm12, %v1421_v32, 0.0 }
 0x21a   : > { %v1467_v33 = vpop.permute.xlu1 %1466 }
 0x21e   : > { %v1352_v35 = vpop.permute.xlu1 %1351 }
 0x21f   : > { %v1354_v38 = vsel %vm1324_vm12, %v1352_v35, 0.0 }
 0x221   : > { %1443 = vadd.xlane.f32.xlu1 %v1442_v36 }
 0x222   : > { %v1371_v37 = vpop.permute.xlu1 %1370 }
 0x223   : > { %v1373_v41 = vsel %vm1324_vm12, %v1371_v37, 0.0 }
 0x225   : > { %1355 = vadd.xlane.f32.xlu1 %v1354_v38 }
 0x226   : > { %v1390_v39 = vpop.permute.xlu1 %1389 }
 0x227   : > { %v1392_v44 = vsel %vm1324_vm12, %v1390_v39, 0.0 }
 0x228   : > { %1347 = vadd.xlane.f32.xlu0 %v1346_v40 }
 0x229   : > { %1374 = vadd.xlane.f32.xlu1 %v1373_v41 }
 0x22a   : > { %v1409_v42 = vpop.permute.xlu1 %1408 }
 0x22b   : > { %v1411_v47 = vsel %vm1324_vm12, %v1409_v42, 0.0 }
 0x22c   : > { %1367 = vadd.xlane.f32.xlu0 %v1366_v43 }
 0x22d   : > { %1393 = vadd.xlane.f32.xlu1 %v1392_v44 }
 0x22e   : > { %v1428_v45 = vpop.permute.xlu1 %1427 }
 0x22f   : > { %v1430_v50 = vsel %vm1324_vm12, %v1428_v45, 0.0 }
 0x230   : > { %1386 = vadd.xlane.f32.xlu0 %v1385_v46 }
 0x231   : > { %1412 = vadd.xlane.f32.xlu1 %v1411_v47 }
 0x232   : > { %v2310_v48 = vpop.permute.xlu1 %1479 }
 0x234   : > { %1405 = vadd.xlane.f32.xlu0 %v1404_v49 }
 0x235   : > { %1431 = vadd.xlane.f32.xlu1 %v1430_v50 }
 0x236   : > { %v1513_v52 = vpop.permute.xlu1 %1512 }
 0x237   : > { %v1515_v53 = vsel %vm1324_vm12, %v1513_v52, 0.0 }
 0x238   : > { %1424 = vadd.xlane.f32.xlu0 %v1423_v51 }
 0x23c   : > { %v2316_v54 = vpop.xlane.xlu0 %1326  ;;  %1516 = vadd.xlane.f32.xlu0 %v1515_v53 }
 0x240   : > { %v1338_v56 = vpop.permute.xlu0 %1337 }
 0x241   : > { %1341 = vst.msk [vmem:[%s2258_s30] sm:$0xf] %vm1340_vm13, %v1338_v56 }
 0x244   : > { %v1359_v57 = vpop.permute.xlu0 %1358 }
 0x245   : > { %1362 = vst.msk [vmem:[%s2258_s30] sm:$0xf] %vm1361_vm14, %v1359_v57 }
 0x248   : > { %v1378_v58 = vpop.permute.xlu0 %1377 }
 0x249   : > { %1381 = vst.msk [vmem:[%s2258_s30] sm:$0xf] %vm1380_vm15, %v1378_v58 }
 0x24c   : > { %v1397_v3 = vpop.permute.xlu0 %1396 }
 0x24d   : > { %1400 = vst.msk [vmem:[%s2258_s30] sm:$0xf] %vm1399_vm0, %v1397_v3 }
 0x250   : > { %v1416_v59 = vpop.permute.xlu0 %1415 }
 0x251   : > { %1419 = vst.msk [vmem:[%s2258_s30] sm:$0xf] %vm1418_vm1, %v1416_v59 }
 0x254   : > { %v1435_v60 = vpop.permute.xlu0 %1434 }
 0x255   : > { %1438 = vst.msk [vmem:[%s2258_s30] sm:$0xf] %vm1437_vm2, %v1435_v60 }
 0x258   : > { %v1447_v61 = vpop.permute.xlu0 %1446 }
 0x259   : > { %v1449_v62 = vsel %vm1324_vm12, %v1447_v61, 0.0 }
 0x25a   : > { %1450 = vadd.xlane.f32.xlu1 %v1449_v62 }
 0x25c   : > { %v1469_v63 = vpop.permute.xlu0 %1468 }
 0x25d   : > { %v1471_v0 = vsel %vm1470_vm4, %v1467_v33, %v1469_v63 }
 0x25e   : > { %v1473_v1 = vsel %vm1324_vm12, %v1471_v0, 0.0 }
 0x25f   : > { %1474 = vadd.xlane.f32.xlu0 %v1473_v1 }
 0x260   : > { %v1495_v2 = vpop.permute.xlu0 %1494 }
 0x261   : > { %v1497_v4 = vsel %vm1324_vm12, %v1495_v2, 0.0 }
 0x262   : > { %1498 = vadd.xlane.f32.xlu1 %v1497_v4 }
 0x264   : > { %v1531_v5 = vpop.permute.xlu0 %1530 }
 0x265   : > { %v1533_v7 = vsel %vm1324_vm12, %v1531_v5, 0.0 }
 0x266   : > { %1534 = vadd.xlane.f32.xlu1 %v1533_v7 }
 0x268   : > { %v1458_v8 = vpop.permute.xlu0 %1457 }
 0x269   : > { %v1459_v55 = vrot.slane %v1458_v8, 4 }
 0x26b   : > { %v1461_v9 = vsel %vm1460_vm5, %v1458_v8, %v1459_v55 }
 0x26c   : > { %1464 = vst.msk [vmem:[%s2258_s30] sm:$0xf] %vm1463_vm6, %v1461_v9  ;;  %v1491_v10 = vpop.permute.xlu0 %1490 }
 0x26d   : > { %1493 = vst.msk [vmem:[%s2258_s30 + $0x4] sm:$0xf] %vm1322_vm11, %v1491_v10 }
 0x270   : > { %v1502_v11 = vpop.permute.xlu0 %1501 }
 0x271   : > { %v1332_v12 = vpop.xlane.xlu1 %1331  ;;  %v1504_v13 = vsel %vm1324_vm12, %v1502_v11, 0.0 }
 0x272   : > { %1505 = vadd.xlane.f32.xlu1 %v1504_v13 }
 0x274   : > { %v1509_v14 = vpop.permute.xlu0 %1508 }
 0x275   : > { %1511 = vst.msk [vmem:[%s2258_s30 + $0x4] sm:$0xf] %vm1340_vm13, %v1509_v14  ;;  %v1482_v15 = vpop.permute.xlu1 %1481 }
 0x276   : > { %v1483_v21 = vsel %vm1470_vm4, %v2310_v48, %v1482_v15 }
 0x277   : > { %v1485_v24 = vsel %vm1324_vm12, %v1483_v21, 0.0 }
 0x278   : > { %v1527_v16 = vpop.permute.xlu0 %1526 }
 0x279   : > { %1529 = vst.msk [vmem:[%s2258_s30 + $0x4] sm:$0xf] %vm1361_vm14, %v1527_v16  ;;  %v1520_v17 = vpop.permute.xlu1 %1519 }
 0x27a   : > { %v1522_v18 = vsel %vm1324_vm12, %v1520_v17, 0.0 }
 0x27b   : > { %1523 = vadd.xlane.f32.xlu1 %v1522_v18 }
 0x27c   : > { %v1538_v19 = vpop.permute.xlu0 %1537 }
 0x27d   : > { %v1540_v20 = vsel %vm1324_vm12, %v1538_v19, 0.0 }
 0x27f   : > { %1541 = vadd.xlane.f32.xlu1 %v1540_v20 }
 0x280   : > { %v1545_v22 = vpop.permute.xlu0 %1544 }
 0x281   : > { %1547 = vst.msk [vmem:[%s2258_s30 + $0x4] sm:$0xf] %vm1380_vm15, %v1545_v22 }
 0x283   : > { %1486 = vadd.xlane.f32.xlu1 %v1485_v24 }
 0x294   : > { %1548 = vrot.lane.b32.xlu1 %v2271_v23, %s2034_s22 }
 0x298   : > { %1555 = vrot.lane.b32.xlu1 %v2290_v27, %s2034_s22 }
 0x2aa   : > { %v1444_v25 = vpop.xlane.xlu1 %1443 }
 0x2ae   : > { %v1356_v28 = vpop.xlane.xlu1 %1355 }
 0x2af   : > { %v1357_v29 = vadd.f32 %v1356_v28, %v1332_v12  ;;  %v1841_v28 = vpack.c.bf16 %v2250_v6, %v2271_v23 }
 0x2b1   : > { %v1348_v30 = vpop.xlane.xlu0 %1347 }
 0x2b2   : > { %v1375_v31 = vpop.xlane.xlu1 %1374  ;;  %v1349_v33 = vadd.f32 %v1348_v30, %v2316_v54 }
 0x2b3   : > { %v1376_v32 = vadd.f32 %v1375_v31, %v1357_v29 }
 0x2b5   : > { %v1368_v34 = vpop.xlane.xlu0 %1367 }
 0x2b6   : > { %v1369_v35 = vadd.f32 %v1368_v34, %v1349_v33  ;;  %v1394_v36 = vpop.xlane.xlu1 %1393 }
 0x2b7   : > { %v1395_v37 = vadd.f32 %v1394_v36, %v1376_v32 }
 0x2b9   : > { %v1387_v38 = vpop.xlane.xlu0 %1386 }
 0x2ba   : > { %v1388_v39 = vadd.f32 %v1387_v38, %v1369_v35  ;;  %v1413_v40 = vpop.xlane.xlu1 %1412 }
 0x2bb   : > { %v1414_v41 = vadd.f32 %v1413_v40, %v1395_v37 }
 0x2bd   : > { %v1406_v42 = vpop.xlane.xlu0 %1405 }
 0x2be   : > { %v1407_v43 = vadd.f32 %v1406_v42, %v1388_v39  ;;  %v1432_v44 = vpop.xlane.xlu1 %1431 }
 0x2bf   : > { %v1433_v45 = vadd.f32 %v1432_v44, %v1414_v41  ;;  %v1842_v44 = vpack.c.bf16 %v2250_v6, %v2250_v6 }
 0x2c1   : > { %v1425_v46 = vpop.xlane.xlu0 %1424 }
 0x2c2   : > { %v1426_v47 = vadd.f32 %v1425_v46, %v1407_v43 }
 0x2c4   : > { %v1445_v48 = vadd.f32 %v1444_v25, %v1426_v47 }
 0x2c5   : > { %v1517_v50 = vpop.xlane.xlu0 %1516 }
 0x2e3   : > { %v1451_v49 = vpop.xlane.xlu1 %1450 }
 0x2e4   : > { %v1452_v51 = vadd.f32 %v1451_v49, %v1433_v45 }
 0x2e8   : > { %v1475_v52 = vpop.xlane.xlu0 %1474 }
 0x2e9   : > { %v1476_v53 = vadd.f32 %v1475_v52, %v1445_v48 }
 0x2eb   : > { %v1499_v54 = vpop.xlane.xlu1 %1498 }
 0x2ec   : > { %v1500_v56 = vadd.f32 %v1499_v54, %v1476_v53 }
 0x2ee   : > { %v1518_v57 = vadd.f32 %v1517_v50, %v1500_v56 }
 0x2ef   : > { %v1535_v58 = vpop.xlane.xlu1 %1534 }
 0x2f0   : > { %v1536_v3 = vadd.f32 %v1535_v58, %v1518_v57 }
 0x2fb   : > { %v1506_v59 = vpop.xlane.xlu1 %1505 }
 0x304   : > { %v1524_v60 = vpop.xlane.xlu1 %1523 }
 0x308   : > { %v1542_v61 = vpop.xlane.xlu1 %1541 }
 0x30c   : > { %v1487_v62 = vpop.xlane.xlu1 %1486 }
 0x30d   : > { %v1488_v63 = vadd.f32 %v1487_v62, %v1452_v51 }
 0x30f   : > { %v1507_v0 = vadd.f32 %v1506_v59, %v1488_v63 }
 0x310   : > { %v1549_v1 = vpop.permute.xlu1 %1548 }
 0x311   : > { %v1551_v2 = vsel %vm1324_vm12, %v1549_v1, 0.0  ;;  %v1525_v4 = vadd.f32 %v1524_v60, %v1507_v0 }
 0x312   : > { %1552 = vadd.xlane.f32.xlu0 %v1551_v2 }
 0x313   : > { %v1543_v5 = vadd.f32 %v1542_v61, %v1525_v4 }
 0x314   : > { %v1556_v7 = vpop.permute.xlu1 %1555 }
 0x315   : > { %v1558_v8 = vsel %vm1324_vm12, %v1556_v7, 0.0 }
 0x316   : > { %1559 = vadd.xlane.f32.xlu1 %v1558_v8 }
 0x328   : > { %1562 = vrot.lane.b32.xlu0 %v2285_v26, %s2035_s24 }
 0x32c   : > { %1566 = vrot.lane.b32.xlu0 %v2271_v23, %s2036_s23 }
 0x330   : > { %1573 = vrot.lane.b32.xlu0 %v2290_v27, %s2036_s23 }
 0x334   : > { %1580 = vrot.lane.b32.xlu0 %v2285_v26, %s2037_s26  ;;  %v1620_v26 = vmul.f32 %v2250_v6, %v2250_v6 }
 0x39b   : > { %v1553_v55 = vpop.xlane.xlu0 %1552 }
 0x39c   : > { %v1554_v9 = vadd.f32 %v1553_v55, %v1536_v3 }
 0x39f   : > { %v1563_v10 = vpop.permute.xlu0 %1562  ;;  %v1560_v16 = vpop.xlane.xlu1 %1559 }
 0x3a0   : > { %1565 = vst.msk [vmem:[%s2258_s30 + $0x4] sm:$0xf] %vm1399_vm0, %v1563_v10  ;;  %v1561_v19 = vadd.f32 %v1560_v16, %v1543_v5 }
 0x3a3   : > { %v1567_v11 = vpop.permute.xlu0 %1566 }
 0x3a4   : > { %v1569_v12 = vsel %vm1324_vm12, %v1567_v11, 0.0 }
 0x3a5   : > { %1570 = vadd.xlane.f32.xlu1 %v1569_v12 }
 0x3a7   : > { %v1574_v13 = vpop.permute.xlu0 %1573 }
 0x3a8   : > { %v1576_v14 = vsel %vm1324_vm12, %v1574_v13, 0.0 }
 0x3a9   : > { %1577 = vadd.xlane.f32.xlu1 %v1576_v14 }
 0x3ab   : > { %v1581_v15 = vpop.permute.xlu0 %1580 }
 0x3ac   : > { %1583 = vst.msk [vmem:[%s2258_s30 + $0x4] sm:$0xf] %vm1418_vm1, %v1581_v15 }
 0x3ba   : > { %1584 = vrot.lane.b32.xlu1 %v2271_v23, %s2038_s28 }
 0x3be   : > { %1591 = vrot.lane.b32.xlu1 %v2290_v27, %s2038_s28 }
 0x3c2   : > { %1610 = vrot.lane.b32.xlu1 %v2271_v23, %s2039_s29 }
 0x3c6   : > { %1612 = vrot.lane.b32.xlu1 %v2250_v6, %s2039_s29 }
 0x3ca   : > { %1622 = vrot.lane.b32.xlu1 %v2290_v27, %s2039_s29 }
 0x3ce   : > { %1637 = vrot.lane.b32.xlu1 %v2250_v6, %s2032_s19 }
 0x3d2   : > { %1644 = vrot.lane.b32.xlu1 %v1620_v26, %s2032_s19 }
 0x42e   : > { %v1571_v17 = vpop.xlane.xlu1 %1570 }
 0x42f   : > { %v1572_v18 = vadd.f32 %v1571_v17, %v1554_v9 }
 0x432   : > { %v1578_v20 = vpop.xlane.xlu1 %1577 }
 0x433   : > { %v1579_v21 = vadd.f32 %v1578_v20, %v1561_v19 }
 0x436   : > { %v1585_v22 = vpop.permute.xlu1 %1584 }
 0x437   : > { %v1587_v24 = vsel %vm1324_vm12, %v1585_v22, 0.0 }
 0x438   : > { %1588 = vadd.xlane.f32.xlu0 %v1587_v24 }
 0x43a   : > { %v1592_v25 = vpop.permute.xlu1 %1591 }
 0x43b   : > { %v1594_v27 = vsel %vm1324_vm12, %v1592_v25, 0.0 }
 0x43c   : > { %1595 = vadd.xlane.f32.xlu1 %v1594_v27 }
 0x43e   : > { %v1611_v29 = vpop.permute.xlu1 %1610 }
 0x442   : > { %v1613_v30 = vpop.permute.xlu1 %1612 }
 0x443   : > { %v1614_v32 = vsel %vm258_vm3, %v1611_v29, %v1613_v30 }
 0x444   : > { %v1616_v34 = vsel %vm1324_vm12, %v1614_v32, 0.0 }
 0x446   : > { %v1623_v31 = vpop.permute.xlu1 %1622 }
 0x44a   : > { %v1638_v33 = vpop.permute.xlu1 %1637 }
 0x44b   : > { %v1640_v35 = vsel %vm1324_vm12, %v1638_v33, 0.0 }
 0x44e   : > { %1624 = vrot.lane.b32.xlu0 %v1620_v26, %s2039_s29  ;;  %v1645_v36 = vpop.permute.xlu1 %1644 }
 0x44f   : > { %v1647_v37 = vsel %vm1324_vm12, %v1645_v36, 0.0 }
 0x452   : > { %1602 = vrot.lane.b32.xlu0 %v1841_v28, %s2040_s4 }
 0x471   : > { %1617 = vadd.xlane.f32.xlu0 %v1616_v34 }
 0x475   : > { %1641 = vadd.xlane.f32.xlu0 %v1640_v35 }
 0x479   : > { %1648 = vadd.xlane.f32.xlu0 %v1647_v37 }
 0x4c1   : > { %v1589_v23 = vpop.xlane.xlu0 %1588 }
 0x4c2   : > { %v1590_v46 = vadd.f32 %v1589_v23, %v1572_v18 }
 0x4c5   : > { %v1625_v38 = vpop.permute.xlu0 %1624  ;;  %v1596_v50 = vpop.xlane.xlu1 %1595 }
 0x4c6   : > { %v1626_v39 = vsel %vm258_vm3, %v1623_v31, %v1625_v38  ;;  %vm1651_vm3 = vcmask 7168   ;;  %v1597_v51 = vadd.f32 %v1596_v50, %v1579_v21 }
 0x4c7   : > { %v1628_v40 = vsel %vm1324_vm12, %v1626_v39, 0.0 }
 0x4c8   : > { %1629 = vadd.xlane.f32.xlu1 %v1628_v40 }
 0x4c9   : > { %v1603_v41 = vpop.permute.xlu0 %1602 }
 0x4ca   : > { %v1604_v42 = vrot.slane %v1603_v41, 4 }
 0x4cc   : > { %v1606_v43 = vsel %vm1605_vm7, %v1603_v41, %v1604_v42 }
 0x4cd   : > { %1608 = vst.msk [vmem:[%s2258_s30 + $0x4] sm:$0xf] %vm1437_vm2, %v1606_v43 }
 0x4d9   : > { %1633 = vrot.lane.b32.xlu1 %v1842_v44, %s2041_s5 }
 0x4fa   : > { %v1618_v45 = vpop.xlane.xlu0 %1617 }
 0x4fb   : > { %v1619_v47 = vadd.f32 %v1618_v45, %v1590_v46 }
 0x4fe   : > { %v1642_v48 = vpop.xlane.xlu0 %1641 }
 0x4ff   : > { %v1643_v49 = vadd.f32 %v1642_v48, %v1619_v47 }
 0x501   : > { %1652 = vst.msk [vmem:[%s226_s8] sm:$0xff] %vm1651_vm3, %v1643_v49 }
 0x502   : > { %v1649_v6 = vpop.xlane.xlu0 %1648 }
 0x551   : > { %v1630_v52 = vpop.xlane.xlu1 %1629 }
 0x552   : > { %v1631_v53 = vadd.f32 %v1630_v52, %v1597_v51 }
 0x554   : > { %v1650_v54 = vadd.f32 %v1649_v6, %v1631_v53 }
 0x555   : > { %v1634_v56 = vpop.permute.xlu1 %1633 }
 0x556   : > { %1654 = vst.msk [vmem:[%s226_s8] sm:$0xff] %vm1653_vm8, %v1650_v54 }
 0x557   : > { %1636 = vst.msk [vmem:[%s2258_s30 + $0x4] sm:$0xf] %vm1463_vm6, %v1634_v56 }
 0x558 PF: > { %s14_s14 = sadd.s32 1, %s2005_s14   ;;  %s2410_s12 = smov %s2001_s13 }
 0x559   : > { %p11_p5 = scmp.ge.s32.totalorder %s14_s14, 4   ;;  %s2411_s13 = smov %s2413_s15 }
 0x55b   :  { %13 = sbr.rel (!%p11_p5) target bundleno = 2 (0x2), region = 78 }

</bundles_post_ra>
